<compile_context>
chip_gen: v5e
topology: v5e:2x2
jax: 0.10.0
libtpu: 0.0.40
codegen_flags: <defaults>
</compile_context>

<pallas_src>
import functools

import jax
import jax.numpy as jnp
from jax.experimental import pallas as pl
from jax.experimental.pallas import tpu as pltpu


def init_params(key, input_size, hidden_size, num_layers, num_classes):
    """Deterministic synthetic parameters (PyTorch-default-style uniform init)."""
    ks = jax.random.split(key, 8 + 4 * num_layers)

    def u(k, shape, fan_in):
        bound = float(fan_in) ** -0.5
        return jax.random.uniform(k, shape, jnp.float32, -bound, bound)

    H = hidden_size
    params = {
        # nn.Conv1d(input_size, 32, k=3): torch weight (32, Cin, 3) -> stored (3, Cin, 32)
        "w1": u(ks[0], (3, input_size, 32), input_size * 3),
        "b1": u(ks[1], (1, 32), input_size * 3),
        # nn.Conv1d(32, 64, k=3): torch weight (64, 32, 3) -> stored (3, 32, 64)
        "w2": u(ks[2], (3, 32, 64), 32 * 3),
        "b2": u(ks[3], (1, 64), 32 * 3),
        # nn.Linear(H, num_classes): torch weight (C, H) -> stored (H, C)
        "fc_w": u(ks[4 + 4 * num_layers], (H, num_classes), H),
        "fc_b": u(ks[5 + 4 * num_layers], (1, num_classes), H),
        "lstm": [],
    }
    for l in range(num_layers):
        in_dim = 64 if l == 0 else H
        k0, k1, k2, k3 = ks[4 + 4 * l: 8 + 4 * l]
        w_ih = u(k0, (in_dim, 4 * H), H)                   # torch weight_ih_l{l}.T
        w_hh = u(k1, (H, 4 * H), H)                        # torch weight_hh_l{l}.T
        b = u(k2, (1, 4 * H), H) + u(k3, (1, 4 * H), H)    # b_ih + b_hh combined
        params["lstm"].append((w_ih, w_hh, b))
    return params


def _full_spec(shape):
    """Whole-array block (constant index map) for weights/biases."""
    return pl.BlockSpec(tuple(shape), lambda b: (0,) * len(shape))


def cnn_lstm_forward(x, params, *, hidden_size, num_layers, num_classes):
    # Mirror the x.dim()==2 branch of the PyTorch forward (valid when input_size == 1).
    if x.ndim == 2:
        x = x[:, :, None]
    x = x.astype(jnp.float32)

    B, L, Cin = x.shape
    H = hidden_size
    L1 = L // 2            # seq length after first MaxPool1d(2)
    T = L1 // 2            # seq length after second MaxPool1d(2) (LSTM timesteps)
    assert L1 * 2 == L and T * 2 == L1, "seq_len must be divisible by 4"

    bf16 = jnp.bfloat16
    lstm_flat = []
    for (w_ih, w_hh, b) in params["lstm"]:
        lstm_flat += [w_ih.astype(bf16), w_hh.astype(bf16), b]
    args = [
        x,
        params["w1"].astype(bf16), params["b1"],
        params["w2"].astype(bf16), params["b2"],
        *lstm_flat,
        params["fc_w"].astype(bf16), params["fc_b"],
    ]
    n_in = len(args)

    def kernel(*refs):
        x_ref, w1_ref, b1_ref, w2_ref, b2_ref = refs[:5]
        lstm_refs = refs[5:5 + 3 * num_layers]
        fcw_ref, fcb_ref = refs[5 + 3 * num_layers], refs[6 + 3 * num_layers]
        out_ref = refs[n_in]
        s0_ref, s1_ref, s2_ref, s3_ref = refs[n_in + 1:]

        f32 = jnp.float32

        # ---- Conv1d(Cin->32, k=3, pad=1) + ReLU ----
        # 'same' padding built in VMEM: zero the 2 edge rows, one slab store of x.
        s0_ref[0:1, :] = jnp.zeros((1, Cin), f32)
        s0_ref[L + 1:L + 2, :] = jnp.zeros((1, Cin), f32)
        s0_ref[1:L + 1, :] = x_ref[0]                        # (L, Cin)
        acc = None
        for k in range(3):
            d = jnp.dot(s0_ref[k:k + L, :].astype(bf16), w1_ref[k],
                        preferred_element_type=f32)
            acc = d if acc is None else acc + d
        h1 = jnp.maximum(acc + b1_ref[...], 0.0)             # (L, 32)

        # ---- MaxPool1d(2): one slab store + two strided reads + one max ----
        s1_ref[...] = h1
        pool1 = jnp.maximum(s1_ref[pl.ds(0, L1, stride=2), :],
                            s1_ref[pl.ds(1, L1, stride=2), :])   # (L1, 32)

        # ---- Conv1d(32->64, k=3, pad=1) + ReLU ----
        s2_ref[0:1, :] = jnp.zeros((1, 32), f32)
        s2_ref[L1 + 1:L1 + 2, :] = jnp.zeros((1, 32), f32)
        s2_ref[1:L1 + 1, :] = pool1
        acc = None
        for k in range(3):
            d = jnp.dot(s2_ref[k:k + L1, :].astype(bf16), w2_ref[k],
                        preferred_element_type=f32)
            acc = d if acc is None else acc + d
        h2 = jnp.maximum(acc + b2_ref[...], 0.0)             # (L1, 64)

        # ---- second MaxPool1d(2) ----
        s3_ref[...] = h2
        seq = jnp.maximum(s3_ref[pl.ds(0, T, stride=2), :],
                          s3_ref[pl.ds(1, T, stride=2), :])      # (T, 64)

        # ---- LSTM: per-layer over time; input projection hoisted off the recurrence ----
        h = None
        for l in range(num_layers):
            w_ih = lstm_refs[3 * l][...]                     # (in_dim, 4H) bf16
            w_hh = lstm_refs[3 * l + 1][...]                 # (H, 4H)     bf16
            bl = lstm_refs[3 * l + 2][...]                   # (1, 4H)     f32
            # One whole-sequence matmul per layer for the input-to-gate projection.
            xproj = jnp.dot(seq.astype(bf16), w_ih,
                            preferred_element_type=f32) + bl     # (T, 4H)
            h = jnp.zeros((1, H), f32)
            c = jnp.zeros((1, H), f32)
            hs = []
            # TODO(synk): for long sequences (T >~ 8) switch this static unroll to
            # lax.fori_loop(..., unroll=True) carrying (h, c) with an hs scratch.
            for t in range(T):
                gates = xproj[t:t + 1, :] + jnp.dot(
                    h.astype(bf16), w_hh, preferred_element_type=f32)   # (1, 4H)
                sg = jax.nn.sigmoid(gates)     # whole-vreg activations, slice afterwards
                tg = jnp.tanh(gates)
                i_g = sg[:, 0:H]
                f_g = sg[:, H:2 * H]
                g_g = tg[:, 2 * H:3 * H]
                o_g = sg[:, 3 * H:4 * H]
                c = f_g * c + i_g * g_g
                h = o_g * jnp.tanh(c)
                if l + 1 < num_layers:
                    hs.append(h)
            if l + 1 < num_layers:
                seq = jnp.concatenate(hs, axis=0)            # (T, H) input to next layer
            # TODO(synk): inter-layer LSTM dropout (p=0.2) is identity at inference.

        # TODO(synk): nn.Dropout(0.5) before fc is identity at inference.
        out = jnp.dot(h.astype(bf16), fcw_ref[...],
                      preferred_element_type=f32) + fcb_ref[...]        # (1, num_classes)
        out_ref[...] = out.reshape(out_ref.shape).astype(out_ref.dtype)

    in_specs = [pl.BlockSpec((1, L, Cin), lambda b: (b, 0, 0))]
    in_specs += [_full_spec(a.shape) for a in args[1:]]

    out = pl.pallas_call(
        kernel,
        grid=(B,),
        in_specs=in_specs,
        out_specs=pl.BlockSpec((1, 1, num_classes), lambda b: (b, 0, 0)),
        out_shape=jax.ShapeDtypeStruct((B, 1, num_classes), jnp.float32),
        scratch_shapes=[
            pltpu.VMEM((L + 2, Cin), jnp.float32),    # zero-padded conv1 input
            pltpu.VMEM((L, 32), jnp.float32),         # conv1 output (pool via strided reads)
            pltpu.VMEM((L1 + 2, 32), jnp.float32),    # zero-padded conv2 input
            pltpu.VMEM((L1, 64), jnp.float32),        # conv2 output (pool via strided reads)
        ],
        compiler_params=pltpu.CompilerParams(dimension_semantics=("parallel",)),
    )(*args)
    return out.reshape(B, num_classes)


if __name__ == "__main__":
    input_size, hidden_size, num_layers, num_classes = 4, 32, 2, 6
    batch, seq_len = 2, 16

    key = jax.random.PRNGKey(0)
    pkey, xkey = jax.random.split(key)
    params = init_params(pkey, input_size, hidden_size, num_layers, num_classes)
    x = jax.random.normal(xkey, (batch, seq_len, input_size), jnp.float32)

    fwd = jax.jit(functools.partial(
        cnn_lstm_forward,
        hidden_size=hidden_size,
        num_layers=num_layers,
        num_classes=num_classes,
    ))
    out = fwd(x, params)
    jax.block_until_ready(out)

    assert out.shape == (batch, num_classes), out.shape
    assert bool(jnp.all(jnp.isfinite(out)))
    print("KERNEL_OK")
</pallas_src>

<mosaic_0001>
module attributes {stable_mosaic.version = 11 : i64} {
  func.func @kernel(%arg0: i32, %arg1: memref<1x16x4xf32, #tpu.memory_space<vmem>>, %arg2: memref<3x4x32xbf16, #tpu.memory_space<vmem>>, %arg3: memref<1x32xf32, #tpu.memory_space<vmem>>, %arg4: memref<3x32x64xbf16, #tpu.memory_space<vmem>>, %arg5: memref<1x64xf32, #tpu.memory_space<vmem>>, %arg6: memref<64x128xbf16, #tpu.memory_space<vmem>>, %arg7: memref<32x128xbf16, #tpu.memory_space<vmem>>, %arg8: memref<1x128xf32, #tpu.memory_space<vmem>>, %arg9: memref<32x128xbf16, #tpu.memory_space<vmem>>, %arg10: memref<32x128xbf16, #tpu.memory_space<vmem>>, %arg11: memref<1x128xf32, #tpu.memory_space<vmem>>, %arg12: memref<32x6xbf16, #tpu.memory_space<vmem>>, %arg13: memref<1x6xf32, #tpu.memory_space<vmem>>, %arg14: memref<1x1x6xf32, #tpu.memory_space<vmem>>, %arg15: memref<18x4xf32, #tpu.memory_space<vmem>>, %arg16: memref<16x32xf32, #tpu.memory_space<vmem>>, %arg17: memref<10x32xf32, #tpu.memory_space<vmem>>, %arg18: memref<8x64xf32, #tpu.memory_space<vmem>>) attributes {dimension_semantics = [#tpu.dimension_semantics<parallel>], iteration_bounds = array<i64: 2>, scalar_prefetch = 0 : i64, scratch_operands = 4 : i64, tpu.core_type = #tpu.core_type<tc>, window_params = [{transform_indices = @transform_0, window_bounds = array<i64: 1, 16, 4>}, {pipeline_mode = #tpu.pipeline_mode<synchronous>, transform_indices = @transform_1, window_bounds = array<i64: 3, 4, 32>}, {pipeline_mode = #tpu.pipeline_mode<synchronous>, transform_indices = @transform_2, window_bounds = array<i64: 1, 32>}, {pipeline_mode = #tpu.pipeline_mode<synchronous>, transform_indices = @transform_3, window_bounds = array<i64: 3, 32, 64>}, {pipeline_mode = #tpu.pipeline_mode<synchronous>, transform_indices = @transform_4, window_bounds = array<i64: 1, 64>}, {pipeline_mode = #tpu.pipeline_mode<synchronous>, transform_indices = @transform_5, window_bounds = array<i64: 64, 128>}, {pipeline_mode = #tpu.pipeline_mode<synchronous>, transform_indices = @transform_6, window_bounds = array<i64: 32, 128>}, {pipeline_mode = #tpu.pipeline_mode<synchronous>, transform_indices = @transform_7, window_bounds = array<i64: 1, 128>}, {pipeline_mode = #tpu.pipeline_mode<synchronous>, transform_indices = @transform_8, window_bounds = array<i64: 32, 128>}, {pipeline_mode = #tpu.pipeline_mode<synchronous>, transform_indices = @transform_9, window_bounds = array<i64: 32, 128>}, {pipeline_mode = #tpu.pipeline_mode<synchronous>, transform_indices = @transform_10, window_bounds = array<i64: 1, 128>}, {pipeline_mode = #tpu.pipeline_mode<synchronous>, transform_indices = @transform_11, window_bounds = array<i64: 32, 6>}, {pipeline_mode = #tpu.pipeline_mode<synchronous>, transform_indices = @transform_12, window_bounds = array<i64: 1, 6>}, {transform_indices = @transform_13, window_bounds = array<i64: 1, 1, 6>}]} {
    %cst = arith.constant 0.000000e+00 : f32
    %0 = vector.broadcast %cst : f32 to vector<1x4xf32>
    %c0 = arith.constant 0 : index
    %c0_0 = arith.constant 0 : index
    %1 = vector.load %arg15[%c0, %c0_0] : memref<18x4xf32, #tpu.memory_space<vmem>>, vector<1x4xf32>
    tpu.vector_store %arg15[%c0, %c0_0], %0 {strides = array<i32>} : memref<18x4xf32, #tpu.memory_space<vmem>>, vector<1x4xf32>,
    %cst_1 = arith.constant 0.000000e+00 : f32
    %2 = vector.broadcast %cst_1 : f32 to vector<1x4xf32>
    %c17 = arith.constant 17 : index
    %c0_2 = arith.constant 0 : index
    %3 = vector.load %arg15[%c17, %c0_2] : memref<18x4xf32, #tpu.memory_space<vmem>>, vector<1x4xf32>
    tpu.vector_store %arg15[%c17, %c0_2], %2 {strides = array<i32>} : memref<18x4xf32, #tpu.memory_space<vmem>>, vector<1x4xf32>,
    %c0_3 = arith.constant 0 : index
    %c0_4 = arith.constant 0 : index
    %c0_5 = arith.constant 0 : index
    %4 = vector.load %arg1[%c0_3, %c0_4, %c0_5] : memref<1x16x4xf32, #tpu.memory_space<vmem>>, vector<1x16x4xf32>
    %5 = vector.shape_cast %4 : vector<1x16x4xf32> to vector<16x4xf32>
    %c1 = arith.constant 1 : index
    %c0_6 = arith.constant 0 : index
    %6 = vector.load %arg15[%c1, %c0_6] : memref<18x4xf32, #tpu.memory_space<vmem>>, vector<16x4xf32>
    tpu.vector_store %arg15[%c1, %c0_6], %5 {strides = array<i32>} : memref<18x4xf32, #tpu.memory_space<vmem>>, vector<16x4xf32>,
    %c0_7 = arith.constant 0 : index
    %c0_8 = arith.constant 0 : index
    %7 = vector.load %arg15[%c0_7, %c0_8] : memref<18x4xf32, #tpu.memory_space<vmem>>, vector<16x4xf32>
    %8 = arith.truncf %7 : vector<16x4xf32> to vector<16x4xbf16>
    %c0_9 = arith.constant 0 : index
    %c0_10 = arith.constant 0 : index
    %c0_11 = arith.constant 0 : index
    %9 = vector.load %arg2[%c0_9, %c0_10, %c0_11] : memref<3x4x32xbf16, #tpu.memory_space<vmem>>, vector<1x4x32xbf16>
    %10 = vector.shape_cast %9 : vector<1x4x32xbf16> to vector<4x32xbf16>
    %cst_12 = arith.constant dense<0.000000e+00> : vector<16x32xf32>
    %11 = tpu.matmul %8, %10, %cst_12 {dimension_numbers = #tpu.dot_dimension_numbers<[1], [0], [0], [1], [0, 0, 1, 1], [], []>} : vector<16x4xbf16>, vector<4x32xbf16>, vector<16x32xf32> -> vector<16x32xf32>
    %c1_13 = arith.constant 1 : index
    %c0_14 = arith.constant 0 : index
    %12 = vector.load %arg15[%c1_13, %c0_14] : memref<18x4xf32, #tpu.memory_space<vmem>>, vector<16x4xf32>
    %13 = arith.truncf %12 : vector<16x4xf32> to vector<16x4xbf16>
    %c1_15 = arith.constant 1 : index
    %c0_16 = arith.constant 0 : index
    %c0_17 = arith.constant 0 : index
    %14 = vector.load %arg2[%c1_15, %c0_16, %c0_17] : memref<3x4x32xbf16, #tpu.memory_space<vmem>>, vector<1x4x32xbf16>
    %15 = vector.shape_cast %14 : vector<1x4x32xbf16> to vector<4x32xbf16>
    %cst_18 = arith.constant dense<0.000000e+00> : vector<16x32xf32>
    %16 = tpu.matmul %13, %15, %cst_18 {dimension_numbers = #tpu.dot_dimension_numbers<[1], [0], [0], [1], [0, 0, 1, 1], [], []>} : vector<16x4xbf16>, vector<4x32xbf16>, vector<16x32xf32> -> vector<16x32xf32>
    %17 = arith.addf %11, %16 : vector<16x32xf32>
    %c2 = arith.constant 2 : index
    %c0_19 = arith.constant 0 : index
    %18 = vector.load %arg15[%c2, %c0_19] : memref<18x4xf32, #tpu.memory_space<vmem>>, vector<16x4xf32>
    %19 = arith.truncf %18 : vector<16x4xf32> to vector<16x4xbf16>
    %c2_20 = arith.constant 2 : index
    %c0_21 = arith.constant 0 : index
    %c0_22 = arith.constant 0 : index
    %20 = vector.load %arg2[%c2_20, %c0_21, %c0_22] : memref<3x4x32xbf16, #tpu.memory_space<vmem>>, vector<1x4x32xbf16>
    %21 = vector.shape_cast %20 : vector<1x4x32xbf16> to vector<4x32xbf16>
    %cst_23 = arith.constant dense<0.000000e+00> : vector<16x32xf32>
    %22 = tpu.matmul %19, %21, %cst_23 {dimension_numbers = #tpu.dot_dimension_numbers<[1], [0], [0], [1], [0, 0, 1, 1], [], []>} : vector<16x4xbf16>, vector<4x32xbf16>, vector<16x32xf32> -> vector<16x32xf32>
    %23 = arith.addf %17, %22 : vector<16x32xf32>
    %c0_24 = arith.constant 0 : index
    %c0_25 = arith.constant 0 : index
    %24 = vector.load %arg3[%c0_24, %c0_25] : memref<1x32xf32, #tpu.memory_space<vmem>>, vector<1x32xf32>
    %25 = vector.broadcast %24 : vector<1x32xf32> to vector<16x32xf32>
    %26 = arith.addf %23, %25 : vector<16x32xf32>
    %cst_26 = arith.constant 0.000000e+00 : f32
    %27 = vector.broadcast %cst_26 : f32 to vector<16x32xf32>
    %28 = arith.maximumf %26, %27 : vector<16x32xf32>
    %c0_27 = arith.constant 0 : index
    %c0_28 = arith.constant 0 : index
    %29 = vector.load %arg16[%c0_27, %c0_28] : memref<16x32xf32, #tpu.memory_space<vmem>>, vector<16x32xf32>
    tpu.vector_store %arg16[%c0_27, %c0_28], %28 {strides = array<i32>} : memref<16x32xf32, #tpu.memory_space<vmem>>, vector<16x32xf32>,
    %c0_29 = arith.constant 0 : index
    %c0_30 = arith.constant 0 : index
    %30 = tpu.strided_load %arg16[%c0_29, %c0_30] {strides = array<i32: 2, 1>} : memref<16x32xf32, #tpu.memory_space<vmem>>, vector<8x32xf32>
    %c1_31 = arith.constant 1 : index
    %c0_32 = arith.constant 0 : index
    %31 = tpu.strided_load %arg16[%c1_31, %c0_32] {strides = array<i32: 2, 1>} : memref<16x32xf32, #tpu.memory_space<vmem>>, vector<8x32xf32>
    %32 = arith.maximumf %30, %31 : vector<8x32xf32>
    %cst_33 = arith.constant 0.000000e+00 : f32
    %33 = vector.broadcast %cst_33 : f32 to vector<1x32xf32>
    %c0_34 = arith.constant 0 : index
    %c0_35 = arith.constant 0 : index
    %34 = vector.load %arg17[%c0_34, %c0_35] : memref<10x32xf32, #tpu.memory_space<vmem>>, vector<1x32xf32>
    tpu.vector_store %arg17[%c0_34, %c0_35], %33 {strides = array<i32>} : memref<10x32xf32, #tpu.memory_space<vmem>>, vector<1x32xf32>,
    %cst_36 = arith.constant 0.000000e+00 : f32
    %35 = vector.broadcast %cst_36 : f32 to vector<1x32xf32>
    %c9 = arith.constant 9 : index
    %c0_37 = arith.constant 0 : index
    %36 = vector.load %arg17[%c9, %c0_37] : memref<10x32xf32, #tpu.memory_space<vmem>>, vector<1x32xf32>
    tpu.vector_store %arg17[%c9, %c0_37], %35 {strides = array<i32>} : memref<10x32xf32, #tpu.memory_space<vmem>>, vector<1x32xf32>,
    %c1_38 = arith.constant 1 : index
    %c0_39 = arith.constant 0 : index
    %37 = vector.load %arg17[%c1_38, %c0_39] : memref<10x32xf32, #tpu.memory_space<vmem>>, vector<8x32xf32>
    tpu.vector_store %arg17[%c1_38, %c0_39], %32 {strides = array<i32>} : memref<10x32xf32, #tpu.memory_space<vmem>>, vector<8x32xf32>,
    %c0_40 = arith.constant 0 : index
    %c0_41 = arith.constant 0 : index
    %38 = vector.load %arg17[%c0_40, %c0_41] : memref<10x32xf32, #tpu.memory_space<vmem>>, vector<8x32xf32>
    %39 = arith.truncf %38 : vector<8x32xf32> to vector<8x32xbf16>
    %c0_42 = arith.constant 0 : index
    %c0_43 = arith.constant 0 : index
    %c0_44 = arith.constant 0 : index
    %40 = vector.load %arg4[%c0_42, %c0_43, %c0_44] : memref<3x32x64xbf16, #tpu.memory_space<vmem>>, vector<1x32x64xbf16>
    %41 = vector.shape_cast %40 : vector<1x32x64xbf16> to vector<32x64xbf16>
    %cst_45 = arith.constant dense<0.000000e+00> : vector<8x64xf32>
    %42 = tpu.matmul %39, %41, %cst_45 {dimension_numbers = #tpu.dot_dimension_numbers<[1], [0], [0], [1], [0, 0, 1, 1], [], []>} : vector<8x32xbf16>, vector<32x64xbf16>, vector<8x64xf32> -> vector<8x64xf32>
    %c1_46 = arith.constant 1 : index
    %c0_47 = arith.constant 0 : index
    %43 = vector.load %arg17[%c1_46, %c0_47] : memref<10x32xf32, #tpu.memory_space<vmem>>, vector<8x32xf32>
    %44 = arith.truncf %43 : vector<8x32xf32> to vector<8x32xbf16>
    %c1_48 = arith.constant 1 : index
    %c0_49 = arith.constant 0 : index
    %c0_50 = arith.constant 0 : index
    %45 = vector.load %arg4[%c1_48, %c0_49, %c0_50] : memref<3x32x64xbf16, #tpu.memory_space<vmem>>, vector<1x32x64xbf16>
    %46 = vector.shape_cast %45 : vector<1x32x64xbf16> to vector<32x64xbf16>
    %cst_51 = arith.constant dense<0.000000e+00> : vector<8x64xf32>
    %47 = tpu.matmul %44, %46, %cst_51 {dimension_numbers = #tpu.dot_dimension_numbers<[1], [0], [0], [1], [0, 0, 1, 1], [], []>} : vector<8x32xbf16>, vector<32x64xbf16>, vector<8x64xf32> -> vector<8x64xf32>
    %48 = arith.addf %42, %47 : vector<8x64xf32>
    %c2_52 = arith.constant 2 : index
    %c0_53 = arith.constant 0 : index
    %49 = vector.load %arg17[%c2_52, %c0_53] : memref<10x32xf32, #tpu.memory_space<vmem>>, vector<8x32xf32>
    %50 = arith.truncf %49 : vector<8x32xf32> to vector<8x32xbf16>
    %c2_54 = arith.constant 2 : index
    %c0_55 = arith.constant 0 : index
    %c0_56 = arith.constant 0 : index
    %51 = vector.load %arg4[%c2_54, %c0_55, %c0_56] : memref<3x32x64xbf16, #tpu.memory_space<vmem>>, vector<1x32x64xbf16>
    %52 = vector.shape_cast %51 : vector<1x32x64xbf16> to vector<32x64xbf16>
    %cst_57 = arith.constant dense<0.000000e+00> : vector<8x64xf32>
    %53 = tpu.matmul %50, %52, %cst_57 {dimension_numbers = #tpu.dot_dimension_numbers<[1], [0], [0], [1], [0, 0, 1, 1], [], []>} : vector<8x32xbf16>, vector<32x64xbf16>, vector<8x64xf32> -> vector<8x64xf32>
    %54 = arith.addf %48, %53 : vector<8x64xf32>
    %c0_58 = arith.constant 0 : index
    %c0_59 = arith.constant 0 : index
    %55 = vector.load %arg5[%c0_58, %c0_59] : memref<1x64xf32, #tpu.memory_space<vmem>>, vector<1x64xf32>
    %56 = vector.broadcast %55 : vector<1x64xf32> to vector<8x64xf32>
    %57 = arith.addf %54, %56 : vector<8x64xf32>
    %cst_60 = arith.constant 0.000000e+00 : f32
    %58 = vector.broadcast %cst_60 : f32 to vector<8x64xf32>
    %59 = arith.maximumf %57, %58 : vector<8x64xf32>
    %c0_61 = arith.constant 0 : index
    %c0_62 = arith.constant 0 : index
    %60 = vector.load %arg18[%c0_61, %c0_62] : memref<8x64xf32, #tpu.memory_space<vmem>>, vector<8x64xf32>
    tpu.vector_store %arg18[%c0_61, %c0_62], %59 {strides = array<i32>} : memref<8x64xf32, #tpu.memory_space<vmem>>, vector<8x64xf32>,
    %c0_63 = arith.constant 0 : index
    %c0_64 = arith.constant 0 : index
    %61 = tpu.strided_load %arg18[%c0_63, %c0_64] {strides = array<i32: 2, 1>} : memref<8x64xf32, #tpu.memory_space<vmem>>, vector<4x64xf32>
    %c1_65 = arith.constant 1 : index
    %c0_66 = arith.constant 0 : index
    %62 = tpu.strided_load %arg18[%c1_65, %c0_66] {strides = array<i32: 2, 1>} : memref<8x64xf32, #tpu.memory_space<vmem>>, vector<4x64xf32>
    %63 = arith.maximumf %61, %62 : vector<4x64xf32>
    %c0_67 = arith.constant 0 : index
    %c0_68 = arith.constant 0 : index
    %64 = vector.load %arg6[%c0_67, %c0_68] : memref<64x128xbf16, #tpu.memory_space<vmem>>, vector<64x128xbf16>
    %c0_69 = arith.constant 0 : index
    %c0_70 = arith.constant 0 : index
    %65 = vector.load %arg7[%c0_69, %c0_70] : memref<32x128xbf16, #tpu.memory_space<vmem>>, vector<32x128xbf16>
    %c0_71 = arith.constant 0 : index
    %c0_72 = arith.constant 0 : index
    %66 = vector.load %arg8[%c0_71, %c0_72] : memref<1x128xf32, #tpu.memory_space<vmem>>, vector<1x128xf32>
    %67 = arith.truncf %63 : vector<4x64xf32> to vector<4x64xbf16>
    %cst_73 = arith.constant dense<0.000000e+00> : vector<4x128xf32>
    %68 = tpu.matmul %67, %64, %cst_73 {dimension_numbers = #tpu.dot_dimension_numbers<[1], [0], [0], [1], [0, 0, 1, 1], [], []>} : vector<4x64xbf16>, vector<64x128xbf16>, vector<4x128xf32> -> vector<4x128xf32>
    %69 = vector.broadcast %66 : vector<1x128xf32> to vector<4x128xf32>
    %70 = arith.addf %68, %69 : vector<4x128xf32>
    %cst_74 = arith.constant 0.000000e+00 : f32
    %71 = vector.broadcast %cst_74 : f32 to vector<1x32xf32>
    %cst_75 = arith.constant 0.000000e+00 : f32
    %72 = vector.broadcast %cst_75 : f32 to vector<1x32xf32>
    %73 = vector.extract_strided_slice %70 {offsets = [0, 0], sizes = [1, 128], strides = [1, 1]} : vector<4x128xf32> to vector<1x128xf32>
    %74 = arith.truncf %71 : vector<1x32xf32> to vector<1x32xbf16>
    %cst_76 = arith.constant dense<0.000000e+00> : vector<1x128xf32>
    %75 = tpu.matmul %74, %65, %cst_76 {dimension_numbers = #tpu.dot_dimension_numbers<[1], [0], [0], [1], [0, 0, 1, 1], [], []>} : vector<1x32xbf16>, vector<32x128xbf16>, vector<1x128xf32> -> vector<1x128xf32>
    %76 = arith.addf %73, %75 : vector<1x128xf32>
    %77 = arith.negf %76 : vector<1x128xf32>
    %78 = math.exp %77 : vector<1x128xf32>
    %cst_77 = arith.constant 1.000000e+00 : f32
    %79 = vector.broadcast %cst_77 : f32 to vector<1x128xf32>
    %80 = arith.addf %79, %78 : vector<1x128xf32>
    %81 = arith.divf %79, %80 : vector<1x128xf32>
    %82 = math.tanh %76 : vector<1x128xf32>
    %83 = vector.extract_strided_slice %81 {offsets = [0, 0], sizes = [1, 32], strides = [1, 1]} : vector<1x128xf32> to vector<1x32xf32>
    %84 = vector.extract_strided_slice %81 {offsets = [0, 32], sizes = [1, 32], strides = [1, 1]} : vector<1x128xf32> to vector<1x32xf32>
    %85 = vector.extract_strided_slice %82 {offsets = [0, 64], sizes = [1, 32], strides = [1, 1]} : vector<1x128xf32> to vector<1x32xf32>
    %86 = vector.extract_strided_slice %81 {offsets = [0, 96], sizes = [1, 32], strides = [1, 1]} : vector<1x128xf32> to vector<1x32xf32>
    %87 = arith.mulf %84, %72 : vector<1x32xf32>
    %88 = arith.mulf %83, %85 : vector<1x32xf32>
    %89 = arith.addf %87, %88 : vector<1x32xf32>
    %90 = math.tanh %89 : vector<1x32xf32>
    %91 = arith.mulf %86, %90 : vector<1x32xf32>
    %92 = vector.extract_strided_slice %70 {offsets = [1, 0], sizes = [1, 128], strides = [1, 1]} : vector<4x128xf32> to vector<1x128xf32>
    %93 = arith.truncf %91 : vector<1x32xf32> to vector<1x32xbf16>
    %cst_78 = arith.constant dense<0.000000e+00> : vector<1x128xf32>
    %94 = tpu.matmul %93, %65, %cst_78 {dimension_numbers = #tpu.dot_dimension_numbers<[1], [0], [0], [1], [0, 0, 1, 1], [], []>} : vector<1x32xbf16>, vector<32x128xbf16>, vector<1x128xf32> -> vector<1x128xf32>
    %95 = arith.addf %92, %94 : vector<1x128xf32>
    %96 = arith.negf %95 : vector<1x128xf32>
    %97 = math.exp %96 : vector<1x128xf32>
    %cst_79 = arith.constant 1.000000e+00 : f32
    %98 = vector.broadcast %cst_79 : f32 to vector<1x128xf32>
    %99 = arith.addf %98, %97 : vector<1x128xf32>
    %100 = arith.divf %98, %99 : vector<1x128xf32>
    %101 = math.tanh %95 : vector<1x128xf32>
    %102 = vector.extract_strided_slice %100 {offsets = [0, 0], sizes = [1, 32], strides = [1, 1]} : vector<1x128xf32> to vector<1x32xf32>
    %103 = vector.extract_strided_slice %100 {offsets = [0, 32], sizes = [1, 32], strides = [1, 1]} : vector<1x128xf32> to vector<1x32xf32>
    %104 = vector.extract_strided_slice %101 {offsets = [0, 64], sizes = [1, 32], strides = [1, 1]} : vector<1x128xf32> to vector<1x32xf32>
    %105 = vector.extract_strided_slice %100 {offsets = [0, 96], sizes = [1, 32], strides = [1, 1]} : vector<1x128xf32> to vector<1x32xf32>
    %106 = arith.mulf %103, %89 : vector<1x32xf32>
    %107 = arith.mulf %102, %104 : vector<1x32xf32>
    %108 = arith.addf %106, %107 : vector<1x32xf32>
    %109 = math.tanh %108 : vector<1x32xf32>
    %110 = arith.mulf %105, %109 : vector<1x32xf32>
    %111 = vector.extract_strided_slice %70 {offsets = [2, 0], sizes = [1, 128], strides = [1, 1]} : vector<4x128xf32> to vector<1x128xf32>
    %112 = arith.truncf %110 : vector<1x32xf32> to vector<1x32xbf16>
    %cst_80 = arith.constant dense<0.000000e+00> : vector<1x128xf32>
    %113 = tpu.matmul %112, %65, %cst_80 {dimension_numbers = #tpu.dot_dimension_numbers<[1], [0], [0], [1], [0, 0, 1, 1], [], []>} : vector<1x32xbf16>, vector<32x128xbf16>, vector<1x128xf32> -> vector<1x128xf32>
    %114 = arith.addf %111, %113 : vector<1x128xf32>
    %115 = arith.negf %114 : vector<1x128xf32>
    %116 = math.exp %115 : vector<1x128xf32>
    %cst_81 = arith.constant 1.000000e+00 : f32
    %117 = vector.broadcast %cst_81 : f32 to vector<1x128xf32>
    %118 = arith.addf %117, %116 : vector<1x128xf32>
    %119 = arith.divf %117, %118 : vector<1x128xf32>
    %120 = math.tanh %114 : vector<1x128xf32>
    %121 = vector.extract_strided_slice %119 {offsets = [0, 0], sizes = [1, 32], strides = [1, 1]} : vector<1x128xf32> to vector<1x32xf32>
    %122 = vector.extract_strided_slice %119 {offsets = [0, 32], sizes = [1, 32], strides = [1, 1]} : vector<1x128xf32> to vector<1x32xf32>
    %123 = vector.extract_strided_slice %120 {offsets = [0, 64], sizes = [1, 32], strides = [1, 1]} : vector<1x128xf32> to vector<1x32xf32>
    %124 = vector.extract_strided_slice %119 {offsets = [0, 96], sizes = [1, 32], strides = [1, 1]} : vector<1x128xf32> to vector<1x32xf32>
    %125 = arith.mulf %122, %108 : vector<1x32xf32>
    %126 = arith.mulf %121, %123 : vector<1x32xf32>
    %127 = arith.addf %125, %126 : vector<1x32xf32>
    %128 = math.tanh %127 : vector<1x32xf32>
    %129 = arith.mulf %124, %128 : vector<1x32xf32>
    %130 = vector.extract_strided_slice %70 {offsets = [3, 0], sizes = [1, 128], strides = [1, 1]} : vector<4x128xf32> to vector<1x128xf32>
    %131 = arith.truncf %129 : vector<1x32xf32> to vector<1x32xbf16>
    %cst_82 = arith.constant dense<0.000000e+00> : vector<1x128xf32>
    %132 = tpu.matmul %131, %65, %cst_82 {dimension_numbers = #tpu.dot_dimension_numbers<[1], [0], [0], [1], [0, 0, 1, 1], [], []>} : vector<1x32xbf16>, vector<32x128xbf16>, vector<1x128xf32> -> vector<1x128xf32>
    %133 = arith.addf %130, %132 : vector<1x128xf32>
    %134 = arith.negf %133 : vector<1x128xf32>
    %135 = math.exp %134 : vector<1x128xf32>
    %cst_83 = arith.constant 1.000000e+00 : f32
    %136 = vector.broadcast %cst_83 : f32 to vector<1x128xf32>
    %137 = arith.addf %136, %135 : vector<1x128xf32>
    %138 = arith.divf %136, %137 : vector<1x128xf32>
    %139 = math.tanh %133 : vector<1x128xf32>
    %140 = vector.extract_strided_slice %138 {offsets = [0, 0], sizes = [1, 32], strides = [1, 1]} : vector<1x128xf32> to vector<1x32xf32>
    %141 = vector.extract_strided_slice %138 {offsets = [0, 32], sizes = [1, 32], strides = [1, 1]} : vector<1x128xf32> to vector<1x32xf32>
    %142 = vector.extract_strided_slice %139 {offsets = [0, 64], sizes = [1, 32], strides = [1, 1]} : vector<1x128xf32> to vector<1x32xf32>
    %143 = vector.extract_strided_slice %138 {offsets = [0, 96], sizes = [1, 32], strides = [1, 1]} : vector<1x128xf32> to vector<1x32xf32>
    %144 = arith.mulf %141, %127 : vector<1x32xf32>
    %145 = arith.mulf %140, %142 : vector<1x32xf32>
    %146 = arith.addf %144, %145 : vector<1x32xf32>
    %147 = math.tanh %146 : vector<1x32xf32>
    %148 = arith.mulf %143, %147 : vector<1x32xf32>
    %149 = tpu.concatenate %91, %110, %129, %148 in 0 : vector<1x32xf32>, vector<1x32xf32>, vector<1x32xf32>, vector<1x32xf32> -> vector<4x32xf32>
    %c0_84 = arith.constant 0 : index
    %c0_85 = arith.constant 0 : index
    %150 = vector.load %arg9[%c0_84, %c0_85] : memref<32x128xbf16, #tpu.memory_space<vmem>>, vector<32x128xbf16>
    %c0_86 = arith.constant 0 : index
    %c0_87 = arith.constant 0 : index
    %151 = vector.load %arg10[%c0_86, %c0_87] : memref<32x128xbf16, #tpu.memory_space<vmem>>, vector<32x128xbf16>
    %c0_88 = arith.constant 0 : index
    %c0_89 = arith.constant 0 : index
    %152 = vector.load %arg11[%c0_88, %c0_89] : memref<1x128xf32, #tpu.memory_space<vmem>>, vector<1x128xf32>
    %153 = arith.truncf %149 : vector<4x32xf32> to vector<4x32xbf16>
    %cst_90 = arith.constant dense<0.000000e+00> : vector<4x128xf32>
    %154 = tpu.matmul %153, %150, %cst_90 {dimension_numbers = #tpu.dot_dimension_numbers<[1], [0], [0], [1], [0, 0, 1, 1], [], []>} : vector<4x32xbf16>, vector<32x128xbf16>, vector<4x128xf32> -> vector<4x128xf32>
    %155 = vector.broadcast %152 : vector<1x128xf32> to vector<4x128xf32>
    %156 = arith.addf %154, %155 : vector<4x128xf32>
    %cst_91 = arith.constant 0.000000e+00 : f32
    %157 = vector.broadcast %cst_91 : f32 to vector<1x32xf32>
    %cst_92 = arith.constant 0.000000e+00 : f32
    %158 = vector.broadcast %cst_92 : f32 to vector<1x32xf32>
    %159 = vector.extract_strided_slice %156 {offsets = [0, 0], sizes = [1, 128], strides = [1, 1]} : vector<4x128xf32> to vector<1x128xf32>
    %160 = arith.truncf %157 : vector<1x32xf32> to vector<1x32xbf16>
    %cst_93 = arith.constant dense<0.000000e+00> : vector<1x128xf32>
    %161 = tpu.matmul %160, %151, %cst_93 {dimension_numbers = #tpu.dot_dimension_numbers<[1], [0], [0], [1], [0, 0, 1, 1], [], []>} : vector<1x32xbf16>, vector<32x128xbf16>, vector<1x128xf32> -> vector<1x128xf32>
    %162 = arith.addf %159, %161 : vector<1x128xf32>
    %163 = arith.negf %162 : vector<1x128xf32>
    %164 = math.exp %163 : vector<1x128xf32>
    %cst_94 = arith.constant 1.000000e+00 : f32
    %165 = vector.broadcast %cst_94 : f32 to vector<1x128xf32>
    %166 = arith.addf %165, %164 : vector<1x128xf32>
    %167 = arith.divf %165, %166 : vector<1x128xf32>
    %168 = math.tanh %162 : vector<1x128xf32>
    %169 = vector.extract_strided_slice %167 {offsets = [0, 0], sizes = [1, 32], strides = [1, 1]} : vector<1x128xf32> to vector<1x32xf32>
    %170 = vector.extract_strided_slice %167 {offsets = [0, 32], sizes = [1, 32], strides = [1, 1]} : vector<1x128xf32> to vector<1x32xf32>
    %171 = vector.extract_strided_slice %168 {offsets = [0, 64], sizes = [1, 32], strides = [1, 1]} : vector<1x128xf32> to vector<1x32xf32>
    %172 = vector.extract_strided_slice %167 {offsets = [0, 96], sizes = [1, 32], strides = [1, 1]} : vector<1x128xf32> to vector<1x32xf32>
    %173 = arith.mulf %170, %158 : vector<1x32xf32>
    %174 = arith.mulf %169, %171 : vector<1x32xf32>
    %175 = arith.addf %173, %174 : vector<1x32xf32>
    %176 = math.tanh %175 : vector<1x32xf32>
    %177 = arith.mulf %172, %176 : vector<1x32xf32>
    %178 = vector.extract_strided_slice %156 {offsets = [1, 0], sizes = [1, 128], strides = [1, 1]} : vector<4x128xf32> to vector<1x128xf32>
    %179 = arith.truncf %177 : vector<1x32xf32> to vector<1x32xbf16>
    %cst_95 = arith.constant dense<0.000000e+00> : vector<1x128xf32>
    %180 = tpu.matmul %179, %151, %cst_95 {dimension_numbers = #tpu.dot_dimension_numbers<[1], [0], [0], [1], [0, 0, 1, 1], [], []>} : vector<1x32xbf16>, vector<32x128xbf16>, vector<1x128xf32> -> vector<1x128xf32>
    %181 = arith.addf %178, %180 : vector<1x128xf32>
    %182 = arith.negf %181 : vector<1x128xf32>
    %183 = math.exp %182 : vector<1x128xf32>
    %cst_96 = arith.constant 1.000000e+00 : f32
    %184 = vector.broadcast %cst_96 : f32 to vector<1x128xf32>
    %185 = arith.addf %184, %183 : vector<1x128xf32>
    %186 = arith.divf %184, %185 : vector<1x128xf32>
    %187 = math.tanh %181 : vector<1x128xf32>
    %188 = vector.extract_strided_slice %186 {offsets = [0, 0], sizes = [1, 32], strides = [1, 1]} : vector<1x128xf32> to vector<1x32xf32>
    %189 = vector.extract_strided_slice %186 {offsets = [0, 32], sizes = [1, 32], strides = [1, 1]} : vector<1x128xf32> to vector<1x32xf32>
    %190 = vector.extract_strided_slice %187 {offsets = [0, 64], sizes = [1, 32], strides = [1, 1]} : vector<1x128xf32> to vector<1x32xf32>
    %191 = vector.extract_strided_slice %186 {offsets = [0, 96], sizes = [1, 32], strides = [1, 1]} : vector<1x128xf32> to vector<1x32xf32>
    %192 = arith.mulf %189, %175 : vector<1x32xf32>
    %193 = arith.mulf %188, %190 : vector<1x32xf32>
    %194 = arith.addf %192, %193 : vector<1x32xf32>
    %195 = math.tanh %194 : vector<1x32xf32>
    %196 = arith.mulf %191, %195 : vector<1x32xf32>
    %197 = vector.extract_strided_slice %156 {offsets = [2, 0], sizes = [1, 128], strides = [1, 1]} : vector<4x128xf32> to vector<1x128xf32>
    %198 = arith.truncf %196 : vector<1x32xf32> to vector<1x32xbf16>
    %cst_97 = arith.constant dense<0.000000e+00> : vector<1x128xf32>
    %199 = tpu.matmul %198, %151, %cst_97 {dimension_numbers = #tpu.dot_dimension_numbers<[1], [0], [0], [1], [0, 0, 1, 1], [], []>} : vector<1x32xbf16>, vector<32x128xbf16>, vector<1x128xf32> -> vector<1x128xf32>
    %200 = arith.addf %197, %199 : vector<1x128xf32>
    %201 = arith.negf %200 : vector<1x128xf32>
    %202 = math.exp %201 : vector<1x128xf32>
    %cst_98 = arith.constant 1.000000e+00 : f32
    %203 = vector.broadcast %cst_98 : f32 to vector<1x128xf32>
    %204 = arith.addf %203, %202 : vector<1x128xf32>
    %205 = arith.divf %203, %204 : vector<1x128xf32>
    %206 = math.tanh %200 : vector<1x128xf32>
    %207 = vector.extract_strided_slice %205 {offsets = [0, 0], sizes = [1, 32], strides = [1, 1]} : vector<1x128xf32> to vector<1x32xf32>
    %208 = vector.extract_strided_slice %205 {offsets = [0, 32], sizes = [1, 32], strides = [1, 1]} : vector<1x128xf32> to vector<1x32xf32>
    %209 = vector.extract_strided_slice %206 {offsets = [0, 64], sizes = [1, 32], strides = [1, 1]} : vector<1x128xf32> to vector<1x32xf32>
    %210 = vector.extract_strided_slice %205 {offsets = [0, 96], sizes = [1, 32], strides = [1, 1]} : vector<1x128xf32> to vector<1x32xf32>
    %211 = arith.mulf %208, %194 : vector<1x32xf32>
    %212 = arith.mulf %207, %209 : vector<1x32xf32>
    %213 = arith.addf %211, %212 : vector<1x32xf32>
    %214 = math.tanh %213 : vector<1x32xf32>
    %215 = arith.mulf %210, %214 : vector<1x32xf32>
    %216 = vector.extract_strided_slice %156 {offsets = [3, 0], sizes = [1, 128], strides = [1, 1]} : vector<4x128xf32> to vector<1x128xf32>
    %217 = arith.truncf %215 : vector<1x32xf32> to vector<1x32xbf16>
    %cst_99 = arith.constant dense<0.000000e+00> : vector<1x128xf32>
    %218 = tpu.matmul %217, %151, %cst_99 {dimension_numbers = #tpu.dot_dimension_numbers<[1], [0], [0], [1], [0, 0, 1, 1], [], []>} : vector<1x32xbf16>, vector<32x128xbf16>, vector<1x128xf32> -> vector<1x128xf32>
    %219 = arith.addf %216, %218 : vector<1x128xf32>
    %220 = arith.negf %219 : vector<1x128xf32>
    %221 = math.exp %220 : vector<1x128xf32>
    %cst_100 = arith.constant 1.000000e+00 : f32
    %222 = vector.broadcast %cst_100 : f32 to vector<1x128xf32>
    %223 = arith.addf %222, %221 : vector<1x128xf32>
    %224 = arith.divf %222, %223 : vector<1x128xf32>
    %225 = math.tanh %219 : vector<1x128xf32>
    %226 = vector.extract_strided_slice %224 {offsets = [0, 0], sizes = [1, 32], strides = [1, 1]} : vector<1x128xf32> to vector<1x32xf32>
    %227 = vector.extract_strided_slice %224 {offsets = [0, 32], sizes = [1, 32], strides = [1, 1]} : vector<1x128xf32> to vector<1x32xf32>
    %228 = vector.extract_strided_slice %225 {offsets = [0, 64], sizes = [1, 32], strides = [1, 1]} : vector<1x128xf32> to vector<1x32xf32>
    %229 = vector.extract_strided_slice %224 {offsets = [0, 96], sizes = [1, 32], strides = [1, 1]} : vector<1x128xf32> to vector<1x32xf32>
    %230 = arith.mulf %227, %213 : vector<1x32xf32>
    %231 = arith.mulf %226, %228 : vector<1x32xf32>
    %232 = arith.addf %230, %231 : vector<1x32xf32>
    %233 = math.tanh %232 : vector<1x32xf32>
    %234 = arith.mulf %229, %233 : vector<1x32xf32>
    %235 = arith.truncf %234 : vector<1x32xf32> to vector<1x32xbf16>
    %c0_101 = arith.constant 0 : index
    %c0_102 = arith.constant 0 : index
    %236 = vector.load %arg12[%c0_101, %c0_102] : memref<32x6xbf16, #tpu.memory_space<vmem>>, vector<32x6xbf16>
    %cst_103 = arith.constant dense<0.000000e+00> : vector<1x6xf32>
    %237 = tpu.matmul %235, %236, %cst_103 {dimension_numbers = #tpu.dot_dimension_numbers<[1], [0], [0], [1], [0, 0, 1, 1], [], []>} : vector<1x32xbf16>, vector<32x6xbf16>, vector<1x6xf32> -> vector<1x6xf32>
    %c0_104 = arith.constant 0 : index
    %c0_105 = arith.constant 0 : index
    %238 = vector.load %arg13[%c0_104, %c0_105] : memref<1x6xf32, #tpu.memory_space<vmem>>, vector<1x6xf32>
    %239 = arith.addf %237, %238 : vector<1x6xf32>
    %240 = vector.shape_cast %239 : vector<1x6xf32> to vector<1x1x6xf32>
    %c0_106 = arith.constant 0 : index
    %c0_107 = arith.constant 0 : index
    %c0_108 = arith.constant 0 : index
    %241 = vector.load %arg14[%c0_106, %c0_107, %c0_108] : memref<1x1x6xf32, #tpu.memory_space<vmem>>, vector<1x1x6xf32>
    tpu.vector_store %arg14[%c0_106, %c0_107, %c0_108], %240 {strides = array<i32>} : memref<1x1x6xf32, #tpu.memory_space<vmem>>, vector<1x1x6xf32>,
    return
  }
  func.func @transform_0(%arg0: i32) -> (i32, i32, i32) {
    %c0_i32 = arith.constant 0 : i32
    %c0_i32_0 = arith.constant 0 : i32
    %c0_i32_1 = arith.constant 0 : i32
    return %arg0, %c0_i32, %c0_i32_0 : i32, i32, i32
  }
  func.func @transform_1(%arg0: i32) -> (i32, i32, i32) {
    %c0_i32 = arith.constant 0 : i32
    %c0_i32_0 = arith.constant 0 : i32
    %c0_i32_1 = arith.constant 0 : i32
    %c0_i32_2 = arith.constant 0 : i32
    return %c0_i32, %c0_i32_0, %c0_i32_1 : i32, i32, i32
  }
  func.func @transform_2(%arg0: i32) -> (i32, i32) {
    %c0_i32 = arith.constant 0 : i32
    %c0_i32_0 = arith.constant 0 : i32
    %c0_i32_1 = arith.constant 0 : i32
    return %c0_i32, %c0_i32_0 : i32, i32
  }
  func.func @transform_3(%arg0: i32) -> (i32, i32, i32) {
    %c0_i32 = arith.constant 0 : i32
    %c0_i32_0 = arith.constant 0 : i32
    %c0_i32_1 = arith.constant 0 : i32
    %c0_i32_2 = arith.constant 0 : i32
    return %c0_i32, %c0_i32_0, %c0_i32_1 : i32, i32, i32
  }
  func.func @transform_4(%arg0: i32) -> (i32, i32) {
    %c0_i32 = arith.constant 0 : i32
    %c0_i32_0 = arith.constant 0 : i32
    %c0_i32_1 = arith.constant 0 : i32
    return %c0_i32, %c0_i32_0 : i32, i32
  }
  func.func @transform_5(%arg0: i32) -> (i32, i32) {
    %c0_i32 = arith.constant 0 : i32
    %c0_i32_0 = arith.constant 0 : i32
    %c0_i32_1 = arith.constant 0 : i32
    return %c0_i32, %c0_i32_0 : i32, i32
  }
  func.func @transform_6(%arg0: i32) -> (i32, i32) {
    %c0_i32 = arith.constant 0 : i32
    %c0_i32_0 = arith.constant 0 : i32
    %c0_i32_1 = arith.constant 0 : i32
    return %c0_i32, %c0_i32_0 : i32, i32
  }
  func.func @transform_7(%arg0: i32) -> (i32, i32) {
    %c0_i32 = arith.constant 0 : i32
    %c0_i32_0 = arith.constant 0 : i32
    %c0_i32_1 = arith.constant 0 : i32
    return %c0_i32, %c0_i32_0 : i32, i32
  }
  func.func @transform_8(%arg0: i32) -> (i32, i32) {
    %c0_i32 = arith.constant 0 : i32
    %c0_i32_0 = arith.constant 0 : i32
    %c0_i32_1 = arith.constant 0 : i32
    return %c0_i32, %c0_i32_0 : i32, i32
  }
  func.func @transform_9(%arg0: i32) -> (i32, i32) {
    %c0_i32 = arith.constant 0 : i32
    %c0_i32_0 = arith.constant 0 : i32
    %c0_i32_1 = arith.constant 0 : i32
    return %c0_i32, %c0_i32_0 : i32, i32
  }
  func.func @transform_10(%arg0: i32) -> (i32, i32) {
    %c0_i32 = arith.constant 0 : i32
    %c0_i32_0 = arith.constant 0 : i32
    %c0_i32_1 = arith.constant 0 : i32
    return %c0_i32, %c0_i32_0 : i32, i32
  }
  func.func @transform_11(%arg0: i32) -> (i32, i32) {
    %c0_i32 = arith.constant 0 : i32
    %c0_i32_0 = arith.constant 0 : i32
    %c0_i32_1 = arith.constant 0 : i32
    return %c0_i32, %c0_i32_0 : i32, i32
  }
  func.func @transform_12(%arg0: i32) -> (i32, i32) {
    %c0_i32 = arith.constant 0 : i32
    %c0_i32_0 = arith.constant 0 : i32
    %c0_i32_1 = arith.constant 0 : i32
    return %c0_i32, %c0_i32_0 : i32, i32
  }
  func.func @transform_13(%arg0: i32) -> (i32, i32, i32) {
    %c0_i32 = arith.constant 0 : i32
    %c0_i32_0 = arith.constant 0 : i32
    %c0_i32_1 = arith.constant 0 : i32
    return %arg0, %c0_i32, %c0_i32_0 : i32, i32, i32
  }
}

</mosaic_0001>

<bundles_post_ra>
// kernel: cnn_lstm_forward.1
= control target key start
LH: loop header
LB: loop body
LE: loop exit
PB: predicated region body
PF: predicated region fallthrough
CT: control target
= control target key end

     0   :  { %s2013_s0 = inlined_call_operand.vmem [shape: f32[2,16,4], index: 0, kind: input, shape index: {}]   ;;  %s2014_s1 = inlined_call_operand.vmem [shape: bf16[3,4,32], index: 1, kind: input, shape index: {}]   ;;  %s2015_s2 = inlined_call_operand.vmem [shape: f32[1,32], index: 2, kind: input, shape index: {}]   ;;  %s2016_s3 = inlined_call_operand.vmem [shape: bf16[3,32,64], index: 3, kind: input, shape index: {}]   ;;  %s2017_s4 = inlined_call_operand.vmem [shape: f32[1,64], index: 4, kind: input, shape index: {}]   ;;  %s2018_s5 = inlined_call_operand.vmem [shape: bf16[64,128], index: 5, kind: input, shape index: {}]   ;;  %s2019_s6 = inlined_call_operand.vmem [shape: bf16[32,128], index: 6, kind: input, shape index: {}]   ;;  %s2020_s7 = inlined_call_operand.vmem [shape: f32[1,128], index: 7, kind: input, shape index: {}]   ;;  %s2021_s8 = inlined_call_operand.vmem [shape: bf16[32,128], index: 8, kind: input, shape index: {}]   ;;  %s2022_s9 = inlined_call_operand.vmem [shape: bf16[32,128], index: 9, kind: input, shape index: {}]   ;;  %s2023_s10 = inlined_call_operand.vmem [shape: f32[1,128], index: 10, kind: input, shape index: {}]   ;;  %s2024_s11 = inlined_call_operand.vmem [shape: bf16[32,6], index: 11, kind: input, shape index: {}]   ;;  %s2025_s12 = inlined_call_operand.vmem [shape: f32[1,6], index: 12, kind: input, shape index: {}]   ;;  %s2026_s13 = inlined_call_operand.hbm [shape: f32[2,1,6], index: 13, kind: output, shape index: {}]  }
   0x1   :  { %2029 = sst [smem:[#allocation9_spill]] %s2013_s0 }
   0x2   :  { %2030 = sst [smem:[#allocation10_spill]] %s2014_s1 }
   0x3   :  { %2031 = sst [smem:[#allocation11_spill]] %s2015_s2 }
   0x4   :  { %2032 = sst [smem:[#allocation12_spill]] %s2016_s3 }
   0x5   :  { %18 = vsyncpa [#allocation7], 0 }
   0x6   :  { %20 = vsyncpa [#allocation7 + $0x1], 0  ;;  %s1776_s25 = smov 0   ;;  %s1778_s26 = smov 0  }
   0x7   :  { %s1780_s27 = smov 0   ;;  %s1782_s28 = smov 0  }
   0x8 LB: > { %s1797_s29 = sadd.s32 4294967295, %s1700_s28   ;;  %s1395_s30 = sadd.s32 4294967294, %s1700_s28   ;;  %s1700_s28 = sphi %s1782_s28, %s2043_s28   ;;  %s1696_s27 = sphi %s1780_s27, %s2042_s27   ;;  %s1692_s26 = sphi %s1778_s26, %s2041_s26   ;;  %s1688_s25 = sphi %s1776_s25, %s2040_s25  }
   0x9   : > { %s1801_s14 = sadd.s32 1, %s1700_s28   ;;  %s311_s15 = sadd.s32 1, %s1696_s27 }
   0xa   : > { %s308_s16 = ssub.s32 %s1700_s28, %s1801_s14  ;;  %p321_p0 = scmp.ne.s32.totalorder %s1696_s27, %s1692_s26 }
   0xb   : > { %p309_p1 = scmp.eq.s32.totalorder %s308_s16, 0  ;;  %p322_p2 = scmp.eq.s32.totalorder %s1797_s29, 1 }
   0xc   : > { %p327_p3 = scmp.ne.s32.totalorder %s1692_s26, %s1688_s25  ;;  %p328_p4 = scmp.eq.s32.totalorder %s1395_s30, 1 }
   0xd   : > { %s1812_s17 = scalar_select %p309_p1, %s1696_s27, %s311_s15  }
   0xe   : > { %p1814_p5 = por %p322_p2, %p321_p0  ;;  %p1818_p6 = por %p328_p4, %p327_p3 }
   0xf   : > { %p1398_p7 = scmp.ge.s32.totalorder %s1700_s28, 1  ;;  %p390_p8 = scmp.lt.s32.totalorder %s1700_s28, 3 }
  0x11   : > { %p391_p9 = pnand %p1398_p7, %p390_p8 }
  0x12   : > { %s2035_s1 = sld [smem:[#allocation10_spill]] (!%p391_p9)  ;;  %p433_p10 = scmp.lt.s32.totalorder (!%p391_p9), %s1797_s29, 1 }
  0x13   : > { %394 = sbr.rel (%p391_p9) target bundleno = 5194 (0x144a), region = 72  ;;  %s2036_s0 = sld [smem:[#allocation9_spill]] (!%p391_p9) }
  0x14   : > { %s2037_s3 = sld [smem:[#allocation12_spill]] (!%p391_p9)  ;;  %s2027_s20 = smov (!%p391_p9), 32  }
  0x15   : > { %s2038_s2 = sld [smem:[#allocation11_spill]] (!%p391_p9)  ;;  %s2039_s21 = smov (!%p391_p9), 32  }
  0x18   : > { %v1401_v0 = vld [vmem:[%s2035_s1 + $0x2] sm:$0x3]  ;;  %vm459_vm0 = vcmask 1041408   ;;  %v450_v1 = vld [vmem:[%s2035_s1] sm:$0x3]  ;;  %vm439_vm1 = vcmask 24576  }
  0x19   : > { %v461_v2 = vsel %vm459_vm0, %v1401_v0, 0  ;;  %v481_v3 = vsel %vm459_vm0, %v450_v1, 0  ;;  %v1404_v4 = vld [vmem:[%s2035_s1 + $0x4] sm:$0x3]  ;;  %s434_s15 = scalar_select %p433_p10, %s1797_s29, 1  ;;  %v1702_v6 = vmov 0.0  }
  0x1a   : > { %470 = vmatpush.bf16.msra.mxu0 %v461_v2  ;;  %490 = vmatpush.bf16.msra.mxu1 %v481_v3  ;;  %v506_v5 = vsel %vm459_vm0, %v1404_v4, 0  ;;  %440 = vst.msk [vmem:[#allocation2] sm:$0x1] %vm439_vm1, %v1702_v6  ;;  %vm444_vm2 = vcmask 31744   ;;  %vm539_vm3 = vcmask 253952   ;;  %v1510_v18 = vld [vmem:[%s2037_s3 + $0x8] sm:$0xff] }
  0x1b   : > { %515 = vmatpush.bf16.msra.mxu2 %v506_v5  ;;  %s1508_s16 = sshll.u32 %s434_s15, 4  ;;  %441 = vst.msk [vmem:[#allocation2 + $0x11] sm:$0x1] %vm439_vm1, %v1702_v6  ;;  %v1514_v19 = vld [vmem:[%s2037_s3 + $0x28] sm:$0xff]  ;;  %v1512_v20 = vld [vmem:[%s2037_s3 + $0x18] sm:$0xff]  ;;  %v1509_v23 = vld [vmem:[%s2037_s3] sm:$0xff] }
  0x1c   : > { %s437_s22 = scalar_lea.vmem %s2036_s0, %s1508_s16  ;;  %540 = vst.msk [vmem:[#allocation4] sm:$0x1] %vm539_vm3, %v1702_v6  ;;  %v1513_v24 = vld [vmem:[%s2037_s3 + $0x20] sm:$0xff]  ;;  %577 = vmatpush.bf16.msra.mxu3 %v1512_v20  ;;  %v1511_v25 = vld [vmem:[%s2037_s3 + $0x10] sm:$0xff]  ;;  %vm532_vm4 = vcmask 261120   ;;  %v1518_v48 = vld [vmem:[%s2018_s5 + $0x18] sm:$0xff] }
  0x1d   : > { %v442_v7 = vld [vmem:[%s437_s22] sm:$0xff]  ;;  %v443_v8 = vld [vmem:[%s437_s22 + $0x8] sm:$0xff]  ;;  %541 = vst.msk [vmem:[#allocation4 + $0x9] sm:$0x1] %vm539_vm3, %v1702_v6  ;;  %v1517_v50 = vld [vmem:[%s2018_s5 + $0x10] sm:$0xff]  ;;  %v1703_v54 = vmov 0   ;;  %s1336_s22 = scalar_lea.hbm %s2026_s13, %s1797_s29 }
  0x1e   : > { %445 = vst.msk [vmem:[#allocation2 + $0x1] sm:$0xff] %vm444_vm2, %v442_v7  ;;  %605 = vmatpush.bf16.msrb.mxu0 %v1510_v18  ;;  %640 = vmatpush.bf16.msrb.mxu1 %v1514_v19  ;;  %v1570_v27 = vld [vmem:[%s2038_s2] ss:$0 sm:$0xff]  ;;  %v1520_v49 = vld [vmem:[%s2019_s6 + $0x8] sm:$0xff]  ;;  %vm654_vm5 = vcmask 523264   ;;  %s1704_s16 = smov 64  }
  0x1f   : > { %446 = vst.msk [vmem:[#allocation2 + $0x9] sm:$0xff] %vm444_vm2, %v443_v8  ;;  %708 = vmatpush.bf16.msrb.mxu2 %v1518_v48  ;;  %v1519_v51 = vld [vmem:[%s2019_s6] sm:$0xff]  ;;  %v1516_v52 = vld [vmem:[%s2018_s5 + $0x8] sm:$0xff]  ;;  %vm978_vm3 = vcmask 1040384   ;;  %s1340_s1 = sshll.u32 %s1336_s22, 4  ;;  %s1341_s1 = int_to_ptr.hbm [resolvable:$true] %s1340_s1 }
  0x20   : > { %578 = vmatpush.bf16.msra.mxu3 %v1511_v25  ;;  %v1515_v53 = vld [vmem:[%s2018_s5] sm:$0xff]  ;;  %s1652_s2 = sshra.s32 %s1341_s1, 4  ;;  %s1653_s2 = int_to_ptr.hbm [resolvable:$true] %s1652_s2 }
  0x21   : > { %v1571_v59 = vld [vmem:[%s2017_s4] ss:$0 sm:$0xff]  ;;  %s1654_s3 = scalar_lea.hbm %s1653_s2, 1  ;;  %p1659_p0 = scmp.lt.s32.totalorder %s1653_s2, %s2026_s13 }
  0x22   : > { %606 = vmatpush.bf16.msrb.mxu0 %v1509_v23  ;;  %641 = vmatpush.bf16.msrb.mxu1 %v1513_v24  ;;  %v1572_v8 = vld [vmem:[%s2020_s7] ss:$0 sm:$0xff]  ;;  %p1655_p11 = scmp.ne.s32.totalorder %s1653_s2, %s1654_s3 }
  0x23   : > { %709 = vmatpush.bf16.msrb.mxu2 %v1517_v50 }
  0x24   : > { %738 = vmatpush.bf16.msrb.mxu3 %v1520_v49  ;;  %p1656_p12 = pnand %p1655_p11, %p1814_p5 }
  0x25   : > { %v451_v9 = vld [vmem:[#allocation2 + $0x1] sm:$0xff] }
  0x26   : > { %v447_v10 = vld [vmem:[#allocation2] sm:$0xff]  ;;  %v452_v11 = vld [vmem:[#allocation2 + $0x9] sm:$0xff]  ;;  %p1657_p13 = pneg %p1656_p12 }
  0x27   : > { %v448_v12 = vld [vmem:[#allocation2 + $0x8] sm:$0xff]  ;;  %v453_v14 = vpack.c.bf16 %v452_v11, %v451_v9  ;;  %710 = vmatpush.bf16.msrb.mxu2 %v1516_v52 }
  0x28   : > { %v497_v13 = vld [vmem:[#allocation2 + $0x2] sm:$0xff]  ;;  %v449_v15 = vpack.c.bf16 %v448_v12, %v447_v10  ;;  %v498_v16 = vld [vmem:[#allocation2 + $0xa] sm:$0xff]  ;;  %739 = vmatpush.bf16.msrb.mxu3 %v1519_v51 }
  0x29   : > { %v499_v17 = vpack.c.bf16 %v498_v16, %v497_v13  ;;  %1402 = vmatmul.msk.bf16.vlgmr.msra.gmra.mxu0 %vm444_vm2, %v453_v14 }
  0x2a   : > { %1403 = vmatmul.msk.bf16.vlgmr.msra.gmra.mxu1 %vm444_vm2, %v449_v15  ;;  %796 = vmatpush.bf16.msra.mxu0 %v1520_v49 }
  0x2b   : > { %1405 = vmatmul.msk.bf16.vlgmr.msra.gmra.mxu2 %vm444_vm2, %v499_v17  ;;  %862 = vmatpush.bf16.msra.mxu1 %v1520_v49 }
  0x2c   : > { %711 = vmatpush.bf16.msrb.mxu2 %v1515_v53 }
  0x2e   : > { %797 = vmatpush.bf16.msra.mxu0 %v1519_v51 }
  0x2f   : > { %863 = vmatpush.bf16.msra.mxu1 %v1519_v51 }
  0x30   : > { %927 = vmatpush.bf16.msra.mxu2 %v1520_v49 }
  0x34   : > { %928 = vmatpush.bf16.msra.mxu2 %v1519_v51 }
  0xa6   : > { %v472_v21 = vpop.f32.mrf.mxu0 }
  0xa7   : > { %v492_v22 = vpop.f32.mrf.mxu1 }
  0xa8   : > { %v493_v26 = vadd.f32 %v492_v22, %v472_v21 }
  0xae   : > { %v517_v28 = vpop.f32.mrf.mxu2  ;;  %v474_v31 = vpop.f32.mrf.mxu0 }
  0xaf   : > { %v522_v29 = vadd.f32 %v517_v28, %v493_v26  ;;  %v494_v32 = vpop.f32.mrf.mxu1 }
  0xb0   : > { %v495_v34 = vadd.f32 %v494_v32, %v474_v31 }
  0xb1   : > { %v528_v30 = vadd.f32 %v1570_v27, %v522_v29 }
  0xb3   : > { %v530_v33 = vmax.f32 %v528_v30, 0.0 }
  0xb5   : > { %533 = vst.msk [vmem:[#allocation3] sm:$0xff] %vm532_vm4, %v530_v33 }
  0xb6   : > { %v519_v35 = vpop.f32.mrf.mxu2 }
  0xb7   : > { %v523_v36 = vadd.f32 %v519_v35, %v495_v34 }
  0xb9   : > { %v529_v37 = vadd.f32 %v1570_v27, %v523_v36 }
  0xbb   : > { %v531_v38 = vmax.f32 %v529_v37, 0.0 }
  0xbd   : > { %534 = vst.msk [vmem:[#allocation3 + $0x8] sm:$0xff] %vm532_vm4, %v531_v38 }
  0xc4   : > { %v535_v39 = vld [vmem:[#allocation3] ss:$2 sm:$0xff]  ;;  %v537_v40 = vld [vmem:[#allocation3 + $0x1] ss:$2 sm:$0xff] }
  0xc5   : > { %v538_v41 = vmax.f32 %v535_v39, %v537_v40 }
  0xc7   : > { %542 = vst.msk [vmem:[#allocation4 + $0x1] sm:$0xff] %vm532_vm4, %v538_v41 }
  0xce   : > { %v549_v42 = vld [vmem:[#allocation4 + $0x1] sm:$0xff] }
  0xcf   : > { %v543_v43 = vld [vmem:[#allocation4] sm:$0xff]  ;;  %v550_v45 = vpack.c.bf16 %v549_v42, %v549_v42 }
  0xd0   : > { %v612_v44 = vld [vmem:[#allocation4 + $0x2] sm:$0xff]  ;;  %v544_v46 = vpack.c.bf16 %v543_v43, %v543_v43 }
  0xd1   : > { %v613_v47 = vpack.c.bf16 %v612_v44, %v612_v44  ;;  %1418 = vmatmul.msk.bf16.vlgmr.msra.gmra.mxu3 %vm532_vm4, %v550_v45 }
  0xd2   : > { %1427 = vmatmul.msk.bf16.vlgmr.msrb.gmra.mxu0 %vm532_vm4, %v544_v46 }
  0xd3   : > { %1440 = vmatmul.msk.bf16.vlgmr.msrb.gmra.mxu1 %vm532_vm4, %v613_v47 }
  0xe1   : > { %740 = vmatmul.bf16.vlgmr.msrb.gmra.mxu3 %v1703_v54 }
 0x14f   : > { %v608_v55 = vpop.f32.mrf.mxu0 }
 0x150   : > { %v643_v56 = vpop.f32.mrf.mxu1 }
 0x154   : > { %v580_v57 = vpop.f32.mrf.mxu3 }
 0x155   : > { %v609_v58 = vadd.f32 %v608_v55, %v580_v57 }
 0x157   : > { %v610_v60 = vpop.f32.mrf.mxu0  ;;  %v647_v61 = vadd.f32 %v643_v56, %v609_v58 }
 0x158   : > { %v645_v62 = vpop.f32.mrf.mxu1 }
 0x159   : > { %v652_v63 = vadd.f32 %v1571_v59, %v647_v61 }
 0x15b   : > { %v653_v0 = vmax.f32 %v652_v63, 0.0 }
 0x15c   : > { %v582_v1 = vpop.f32.mrf.mxu3 }
 0x15d   : > { %655 = vst.msk [vmem:[#allocation5] sm:$0xff] %vm654_vm5, %v653_v0 }
 0x164   : > { %v656_v2 = vld [vmem:[#allocation5] ss:$2 sm:$0xf]  ;;  %v658_v3 = vld [vmem:[#allocation5 + $0x1] ss:$2 sm:$0xf]  ;;  %v741_v6 = vpop.f32.mrf.mxu3 }
 0x165   : > { %v659_v4 = vmax.f32 %v656_v2, %v658_v3 }
 0x167   : > { %v673_v5 = vpack.c.bf16 %v659_v4, %v659_v4 }
 0x169   : > { %1457 = vmatmul.msk.bf16.vlgmr.msrb.gmra.mxu2 %vm654_vm5, %v673_v5 }
 0x16c   : > { %v743_v7 = vpop.f32.mrf.mxu3 }
 0x1ec   : > { %v713_v9 = vpop.f32.mrf.mxu2 }
 0x1ed   : > { %v1898_v10 = vadd.f32 %v1572_v8, %v713_v9 }
 0x1ef   : > { %v745_v11 = vadd.f32 %v741_v6, %v1898_v10 }
 0x1f1   : > { %1574 = vtanh.f32 %v745_v11  ;;  %v1466_v14 = vmul.f32 -1.442695, %v745_v11 }
 0x1f3   : > { %1576 = vpow2.f32 %v1466_v14 }
 0x1f4   : > { %v715_v12 = vpop.f32.mrf.mxu2 }
 0x1f7   : > { %v1575_v13 = vpop.eup %1574 }
 0x1f8   : > { %768 = vrot.lane.b32.xlu0 %v1575_v13, %s1704_s16 }
 0x1f9   : > { %v1577_v15 = vpop.eup %1576 }
 0x1fa   : > { %v749_v16 = vadd.f32 1.0, %v1577_v15 }
 0x1fc   : > { %1578 = vrcp.f32 %v749_v16  ;;  %v761_v22 = vand.u32 2147483648, %v749_v16  ;;  %vm755_vm7 = vweird.f32 %v749_v16  ;;  %v759_v23 = vand.u32 2147483647, %v749_v16 }
 0x1fe   : > { %v762_v25 = vor.u32 1.1754944e-38, %v761_v22  ;;  %vm760_vm9 = vcmp.eq.f32.partialorder %v759_v23, 8.507059e+37 }
 0x202   : > { %v1579_v17 = vpop.eup %1578 }
 0x203   : > { %v751_v18 = vmul.f32 %v1579_v17, %v749_v16  ;;  %vm756_vm6 = vweird.f32 %v1579_v17 }
 0x204   : > { %vm757_vm8 = vmor %vm755_vm7, %vm756_vm6 }
 0x205   : > { %v752_v19 = vsub.f32 1.0, %v751_v18 }
 0x207   : > { %v753_v20 = vmul.f32 %v1579_v17, %v752_v19 }
 0x209   : > { %v754_v21 = vadd.f32 %v1579_v17, %v753_v20 }
 0x20b   : > { %v758_v24 = vsel %vm757_vm8, %v1579_v17, %v754_v21  ;;  %vm981_vm8 = vcmask 1042432  }
 0x20c   : > { %v763_v27 = vsel %vm760_vm9, %v762_v25, %v758_v24 }
 0x20d   : > { %v766_v29 = vmul.f32 0.0, %v763_v27 }
 0x26a   : > { %v769_v26 = vpop.permute.xlu0 %768 }
 0x26b   : > { %v771_v28 = vmul.f32 %v769_v26, %v763_v27 }
 0x26d   : > { %773 = vrot.lane.b32.xlu0 %v771_v28, %s2027_s20 }
 0x2df   : > { %v774_v30 = vpop.permute.xlu0 %773 }
 0x2e0   : > { %v776_v31 = vadd.f32 %v774_v30, %v766_v29 }
 0x2e2   : > { %1580 = vtanh.f32 %v776_v31  ;;  %v828_v58 = vrot.slane %v776_v31, 7 }
 0x2e8   : > { %v1581_v32 = vpop.eup %1580 }
 0x2e9   : > { %779 = vrot.lane.b32.xlu1 %v1581_v32, %s1704_s16 }
 0x35b   : > { %v780_v33 = vpop.permute.xlu1 %779 }
 0x35c   : > { %v1904_v34 = vmul.f32 %v780_v33, %v763_v27 }
 0x35e   : > { %v783_v35 = vpack.c.bf16 %v1904_v34, %v1904_v34 }
 0x360   : > { %785 = vrot.lane.b32.xlu1 %v783_v35, %s2027_s20 }
 0x3d2   : > { %v786_v36 = vpop.permute.xlu1 %785 }
 0x3d3   : > { %1467 = vmatmul.msk.bf16.vlgmr.msra.gmra.mxu0 %vm532_vm4, %v786_v36 }
 0x450   : > { %v799_v37 = vpop.f32.mrf.mxu0 }
 0x451   : > { %v804_v38 = vrot.slane %v799_v37, 7 }
 0x453   : > { %v806_v39 = vadd.f32 %v804_v38, %v1898_v10 }
 0x455   : > { %1582 = vtanh.f32 %v806_v39  ;;  %v1468_v42 = vmul.f32 -1.442695, %v806_v39 }
 0x457   : > { %1584 = vpow2.f32 %v1468_v42 }
 0x458   : > { %v801_v40 = vpop.f32.mrf.mxu0 }
 0x45b   : > { %v1583_v41 = vpop.eup %1582 }
 0x45c   : > { %832 = vrot.lane.b32.xlu2 %v1583_v41, %s1704_s16 }
 0x45d   : > { %v1585_v43 = vpop.eup %1584 }
 0x45e   : > { %v810_v44 = vadd.f32 1.0, %v1585_v43 }
 0x460   : > { %1586 = vrcp.f32 %v810_v44  ;;  %v822_v50 = vand.u32 2147483648, %v810_v44  ;;  %vm816_vm11 = vweird.f32 %v810_v44  ;;  %v820_v51 = vand.u32 2147483647, %v810_v44 }
 0x462   : > { %v823_v53 = vor.u32 1.1754944e-38, %v822_v50  ;;  %vm821_vm13 = vcmp.eq.f32.partialorder %v820_v51, 8.507059e+37 }
 0x466   : > { %v1587_v45 = vpop.eup %1586 }
 0x467   : > { %v812_v46 = vmul.f32 %v1587_v45, %v810_v44  ;;  %vm817_vm10 = vweird.f32 %v1587_v45 }
 0x468   : > { %vm818_vm12 = vmor %vm816_vm11, %vm817_vm10 }
 0x469   : > { %v813_v47 = vsub.f32 1.0, %v812_v46 }
 0x46b   : > { %v814_v48 = vmul.f32 %v1587_v45, %v813_v47 }
 0x46d   : > { %v815_v49 = vadd.f32 %v1587_v45, %v814_v48 }
 0x46f   : > { %v819_v52 = vsel %vm818_vm12, %v1587_v45, %v815_v49 }
 0x470   : > { %v824_v56 = vsel %vm821_vm13, %v823_v53, %v819_v52 }
 0x471   : > { %v830_v59 = vmul.f32 %v828_v58, %v824_v56 }
 0x4b6   : > { %v833_v55 = vpop.permute.xlu2 %832 }
 0x4b7   : > { %v835_v57 = vmul.f32 %v833_v55, %v824_v56 }
 0x4b9   : > { %837 = vrot.lane.b32.xlu2 %v835_v57, %s2027_s20 }
 0x513   : > { %v838_v60 = vpop.permute.xlu2 %837 }
 0x514   : > { %v840_v61 = vadd.f32 %v838_v60, %v830_v59 }
 0x516   : > { %1588 = vtanh.f32 %v840_v61  ;;  %v894_v25 = vrot.slane %v840_v61, 7 }
 0x51c   : > { %v1589_v62 = vpop.eup %1588 }
 0x51d   : > { %843 = vrot.lane.b32.xlu0 %v1589_v62, %s1704_s16  ;;  %v1522_v62 = vld [vmem:[%s2021_s8 + $0x8] sm:$0xff] }
 0x51e   : > { %1020 = vmatpush.bf16.msra.mxu3 %v1522_v62 }
 0x58f   : > { %v844_v63 = vpop.permute.xlu0 %843 }
 0x590   : > { %v846_v0 = vmul.f32 %v844_v63, %v824_v56  ;;  %v1524_v63 = vld [vmem:[%s2022_s9 + $0x8] sm:$0xff] }
 0x591   : > { %1045 = vmatpush.bf16.msrb.mxu0 %v1524_v63  ;;  %1103 = vmatpush.bf16.msrb.mxu1 %v1524_v63 }
 0x592   : > { %v847_v1 = vpack.c.bf16 %v846_v0, %v846_v0  ;;  %v979_v32 = vsel %vm978_vm3, %v1904_v34, %v846_v0  ;;  %v1521_v0 = vld [vmem:[%s2021_s8] sm:$0xff]  ;;  %1169 = vmatpush.bf16.msrb.mxu2 %v1524_v63 }
 0x593   : > { %1021 = vmatpush.bf16.msra.mxu3 %v1521_v0 }
 0x594   : > { %v849_v2 = vshrl.u32 %v847_v1, 16  ;;  %v1523_v1 = vld [vmem:[%s2022_s9] sm:$0xff] }
 0x595   : > { %1046 = vmatpush.bf16.msrb.mxu0 %v1523_v1  ;;  %1104 = vmatpush.bf16.msrb.mxu1 %v1523_v1 }
 0x596   : > { %851 = vrot.lane.b32.xlu1 %v849_v2, %s2027_s20  ;;  %1170 = vmatpush.bf16.msrb.mxu2 %v1523_v1 }
 0x597   : > { %1234 = vmatpush.bf16.msrb.mxu3 %v1524_v63 }
 0x598   : > { %1047 = vmatmul.bf16.vlgmr.msrb.gmra.mxu0 %v1703_v54 }
 0x59b   : > { %1235 = vmatpush.bf16.msrb.mxu3 %v1523_v1 }
 0x608   : > { %v852_v3 = vpop.permute.xlu1 %851 }
 0x609   : > { %1469 = vmatmul.msk.bf16.vlgmr.msra.gmra.mxu1 %vm532_vm4, %v852_v3 }
 0x686   : > { %v865_v4 = vpop.f32.mrf.mxu1 }
 0x687   : > { %v870_v5 = vrot.slane %v865_v4, 6 }
 0x689   : > { %v872_v6 = vadd.f32 %v870_v5, %v1898_v10 }
 0x68b   : > { %1590 = vtanh.f32 %v872_v6  ;;  %v1470_v9 = vmul.f32 -1.442695, %v872_v6  ;;  %v1048_v6 = vpop.f32.mrf.mxu0 }
 0x68d   : > { %1592 = vpow2.f32 %v1470_v9  ;;  %v1573_v9 = vld [vmem:[%s2023_s10] ss:$0 sm:$0xff] }
 0x68e   : > { %v867_v7 = vpop.f32.mrf.mxu1 }
 0x691   : > { %v1591_v8 = vpop.eup %1590 }
 0x692   : > { %898 = vrot.lane.b32.xlu2 %v1591_v8, %s1704_s16 }
 0x693   : > { %v1593_v11 = vpop.eup %1592  ;;  %v1050_v7 = vpop.f32.mrf.mxu0 }
 0x694   : > { %v876_v12 = vadd.f32 1.0, %v1593_v11 }
 0x696   : > { %1594 = vrcp.f32 %v876_v12  ;;  %v888_v18 = vand.u32 2147483648, %v876_v12  ;;  %vm882_vm15 = vweird.f32 %v876_v12  ;;  %v886_v19 = vand.u32 2147483647, %v876_v12 }
 0x698   : > { %v889_v21 = vor.u32 1.1754944e-38, %v888_v18  ;;  %vm887_vm2 = vcmp.eq.f32.partialorder %v886_v19, 8.507059e+37 }
 0x69c   : > { %v1595_v13 = vpop.eup %1594 }
 0x69d   : > { %v878_v14 = vmul.f32 %v1595_v13, %v876_v12  ;;  %vm883_vm14 = vweird.f32 %v1595_v13 }
 0x69e   : > { %vm884_vm1 = vmor %vm882_vm15, %vm883_vm14 }
 0x69f   : > { %v879_v15 = vsub.f32 1.0, %v878_v14 }
 0x6a1   : > { %v880_v16 = vmul.f32 %v1595_v13, %v879_v15 }
 0x6a3   : > { %v881_v17 = vadd.f32 %v1595_v13, %v880_v16 }
 0x6a5   : > { %v885_v20 = vsel %vm884_vm1, %v1595_v13, %v881_v17 }
 0x6a6   : > { %v890_v23 = vsel %vm887_vm2, %v889_v21, %v885_v20 }
 0x6a7   : > { %v896_v26 = vmul.f32 %v894_v25, %v890_v23 }
 0x6ec   : > { %v899_v22 = vpop.permute.xlu2 %898 }
 0x6ed   : > { %v901_v24 = vmul.f32 %v899_v22, %v890_v23 }
 0x6ef   : > { %903 = vrot.lane.b32.xlu0 %v901_v24, %s2027_s20 }
 0x761   : > { %v904_v27 = vpop.permute.xlu0 %903 }
 0x762   : > { %v906_v28 = vadd.f32 %v904_v27, %v896_v26 }
 0x764   : > { %1596 = vtanh.f32 %v906_v28  ;;  %v959_v57 = vrot.slane %v906_v28, 7 }
 0x76a   : > { %v1597_v29 = vpop.eup %1596 }
 0x76b   : > { %909 = vrot.lane.b32.xlu1 %v1597_v29, %s1704_s16 }
 0x7dd   : > { %v910_v30 = vpop.permute.xlu1 %909 }
 0x7de   : > { %v912_v31 = vmul.f32 %v910_v30, %v890_v23 }
 0x7e0   : > { %v913_v33 = vpack.c.bf16 %v912_v31, %v912_v31  ;;  %v980_v35 = vsel %vm459_vm0, %v979_v32, %v912_v31 }
 0x7e2   : > { %v915_v36 = vrot.slane %v913_v33, 1 }
 0x7e4   : > { %916 = vrot.lane.b32.xlu2 %v915_v36, %s2027_s20 }
 0x83e   : > { %v917_v37 = vpop.permute.xlu2 %916 }
 0x83f   : > { %1471 = vmatmul.msk.bf16.vlgmr.msra.gmra.mxu2 %vm532_vm4, %v917_v37 }
 0x8c2   : > { %v930_v38 = vpop.f32.mrf.mxu2 }
 0x8c3   : > { %v935_v39 = vrot.slane %v930_v38, 5 }
 0x8c5   : > { %v937_v40 = vadd.f32 %v935_v39, %v1898_v10 }
 0x8c7   : > { %1598 = vtanh.f32 %v937_v40  ;;  %v1472_v43 = vmul.f32 -1.442695, %v937_v40 }
 0x8c9   : > { %1600 = vpow2.f32 %v1472_v43 }
 0x8ca   : > { %v932_v41 = vpop.f32.mrf.mxu2 }
 0x8cd   : > { %v1599_v42 = vpop.eup %1598 }
 0x8ce   : > { %963 = vrot.lane.b32.xlu0 %v1599_v42, %s1704_s16 }
 0x8cf   : > { %v1601_v34 = vpop.eup %1600 }
 0x8d0   : > { %v941_v44 = vadd.f32 1.0, %v1601_v34 }
 0x8d2   : > { %1602 = vrcp.f32 %v941_v44  ;;  %v953_v50 = vand.u32 2147483648, %v941_v44  ;;  %vm947_vm5 = vweird.f32 %v941_v44  ;;  %v951_v51 = vand.u32 2147483647, %v941_v44 }
 0x8d4   : > { %v954_v52 = vor.u32 1.1754944e-38, %v953_v50  ;;  %vm952_vm7 = vcmp.eq.f32.partialorder %v951_v51, 8.507059e+37 }
 0x8d8   : > { %v1603_v45 = vpop.eup %1602 }
 0x8d9   : > { %v943_v46 = vmul.f32 %v1603_v45, %v941_v44  ;;  %vm948_vm0 = vweird.f32 %v1603_v45 }
 0x8da   : > { %vm949_vm6 = vmor %vm947_vm5, %vm948_vm0 }
 0x8db   : > { %v944_v47 = vsub.f32 1.0, %v943_v46 }
 0x8dd   : > { %v945_v48 = vmul.f32 %v1603_v45, %v944_v47 }
 0x8df   : > { %v946_v49 = vadd.f32 %v1603_v45, %v945_v48 }
 0x8e1   : > { %v950_v10 = vsel %vm949_vm6, %v1603_v45, %v946_v49 }
 0x8e2   : > { %v955_v55 = vsel %vm952_vm7, %v954_v52, %v950_v10 }
 0x8e3   : > { %v961_v58 = vmul.f32 %v959_v57, %v955_v55 }
 0x940   : > { %v964_v53 = vpop.permute.xlu0 %963 }
 0x941   : > { %v966_v56 = vmul.f32 %v964_v53, %v955_v55 }
 0x943   : > { %968 = vrot.lane.b32.xlu1 %v966_v56, %s2027_s20  ;;  %s1658_s20 = scalar_lea.hbm %s2026_s13, 2 }
 0x944   : > { %p1660_p1 = scmp.lt.s32.totalorder %s1658_s20, %s1654_s3 }
 0x946   : > { %p1661_p2 = por %p1660_p1, %p1659_p0 }
 0x948   : > { %p1662_p3 = pnand %p1661_p2, %p1657_p13 }
 0x9b5   : > { %v969_v59 = vpop.permute.xlu1 %968 }
 0x9b6   : > { %v971_v60 = vadd.f32 %v969_v59, %v961_v58 }
 0x9b8   : > { %1604 = vtanh.f32 %v971_v60 }
 0x9be   : > { %v1605_v61 = vpop.eup %1604 }
 0x9bf   : > { %974 = vrot.lane.b32.xlu2 %v1605_v61, %s1704_s16 }
 0xa19   : > { %v975_v2 = vpop.permute.xlu2 %974 }
 0xa1a   : > { %v977_v3 = vmul.f32 %v975_v2, %v955_v55 }
 0xa1c   : > { %v982_v4 = vsel %vm981_vm8, %v980_v35, %v977_v3 }
 0xa1d   : > { %v992_v5 = vpack.c.bf16 %v982_v4, %v982_v4 }
 0xa1f   : > { %997 = vrot.lane.b32.xlu0 %v992_v5, %s2039_s21 }
 0xa91   : > { %v998_v8 = vpop.permute.xlu0 %997 }
 0xa92   : > { %1481 = vmatmul.msk.bf16.vlgmr.msra.gmra.mxu3 %vm532_vm4, %v998_v8 }
 0xb15   : > { %v1023_v11 = vpop.f32.mrf.mxu3 }
 0xb16   : > { %v1946_v12 = vadd.f32 %v1573_v9, %v1023_v11 }
 0xb18   : > { %v1052_v54 = vadd.f32 %v1048_v6, %v1946_v12 }
 0xb1a   : > { %1606 = vtanh.f32 %v1052_v54  ;;  %v1490_v15 = vmul.f32 -1.442695, %v1052_v54 }
 0xb1c   : > { %1608 = vpow2.f32 %v1490_v15 }
 0xb1d   : > { %v1025_v13 = vpop.f32.mrf.mxu3 }
 0xb20   : > { %v1607_v14 = vpop.eup %1606 }
 0xb21   : > { %1075 = vrot.lane.b32.xlu1 %v1607_v14, %s1704_s16 }
 0xb22   : > { %v1609_v16 = vpop.eup %1608 }
 0xb23   : > { %v1056_v17 = vadd.f32 1.0, %v1609_v16 }
 0xb25   : > { %1610 = vrcp.f32 %v1056_v17  ;;  %v1068_v23 = vand.u32 2147483648, %v1056_v17  ;;  %vm1062_vm10 = vweird.f32 %v1056_v17  ;;  %v1066_v24 = vand.u32 2147483647, %v1056_v17 }
 0xb27   : > { %v1069_v26 = vor.u32 1.1754944e-38, %v1068_v23  ;;  %vm1067_vm12 = vcmp.eq.f32.partialorder %v1066_v24, 8.507059e+37 }
 0xb2b   : > { %v1611_v18 = vpop.eup %1610 }
 0xb2c   : > { %v1058_v19 = vmul.f32 %v1611_v18, %v1056_v17  ;;  %vm1063_vm9 = vweird.f32 %v1611_v18 }
 0xb2d   : > { %vm1064_vm11 = vmor %vm1062_vm10, %vm1063_vm9  ;;  %vm1325_vm10 = vcmask 40960  }
 0xb2e   : > { %v1059_v20 = vsub.f32 1.0, %v1058_v19 }
 0xb30   : > { %v1060_v21 = vmul.f32 %v1611_v18, %v1059_v20 }
 0xb32   : > { %v1061_v22 = vadd.f32 %v1611_v18, %v1060_v21 }
 0xb34   : > { %v1065_v25 = vsel %vm1064_vm11, %v1611_v18, %v1061_v22 }
 0xb35   : > { %v1070_v28 = vsel %vm1067_vm12, %v1069_v26, %v1065_v25 }
 0xb36   : > { %v1073_v30 = vmul.f32 0.0, %v1070_v28 }
 0xb93   : > { %v1076_v27 = vpop.permute.xlu1 %1075 }
 0xb94   : > { %v1078_v29 = vmul.f32 %v1076_v27, %v1070_v28 }
 0xb96   : > { %1080 = vrot.lane.b32.xlu2 %v1078_v29, %s2039_s21 }
 0xbf0   : > { %v1081_v31 = vpop.permute.xlu2 %1080 }
 0xbf1   : > { %v1083_v32 = vadd.f32 %v1081_v31, %v1073_v30 }
 0xbf3   : > { %1612 = vtanh.f32 %v1083_v32  ;;  %v1135_v58 = vrot.slane %v1083_v32, 7 }
 0xbf9   : > { %v1613_v33 = vpop.eup %1612 }
 0xbfa   : > { %1086 = vrot.lane.b32.xlu0 %v1613_v33, %s1704_s16 }
 0xc6c   : > { %v1087_v35 = vpop.permute.xlu0 %1086 }
 0xc6d   : > { %v1089_v36 = vmul.f32 %v1087_v35, %v1070_v28 }
 0xc6f   : > { %v1090_v37 = vpack.c.bf16 %v1089_v36, %v1089_v36 }
 0xc71   : > { %1092 = vrot.lane.b32.xlu1 %v1090_v37, %s2039_s21 }
 0xce3   : > { %v1093_v38 = vpop.permute.xlu1 %1092 }
 0xce4   : > { %1491 = vmatmul.msk.bf16.vlgmr.msrb.gmra.mxu1 %vm532_vm4, %v1093_v38 }
 0xd61   : > { %v1106_v39 = vpop.f32.mrf.mxu1 }
 0xd62   : > { %v1111_v40 = vrot.slane %v1106_v39, 7 }
 0xd64   : > { %v1113_v41 = vadd.f32 %v1111_v40, %v1946_v12 }
 0xd66   : > { %1614 = vtanh.f32 %v1113_v41  ;;  %v1492_v34 = vmul.f32 -1.442695, %v1113_v41 }
 0xd68   : > { %1616 = vpow2.f32 %v1492_v34 }
 0xd69   : > { %v1108_v42 = vpop.f32.mrf.mxu1 }
 0xd6c   : > { %v1615_v43 = vpop.eup %1614 }
 0xd6d   : > { %1139 = vrot.lane.b32.xlu2 %v1615_v43, %s1704_s16 }
 0xd6e   : > { %v1617_v44 = vpop.eup %1616 }
 0xd6f   : > { %v1117_v45 = vadd.f32 1.0, %v1617_v44 }
 0xd71   : > { %1618 = vrcp.f32 %v1117_v45  ;;  %v1129_v51 = vand.u32 2147483648, %v1117_v45  ;;  %vm1123_vm14 = vweird.f32 %v1117_v45  ;;  %v1127_v10 = vand.u32 2147483647, %v1117_v45 }
 0xd73   : > { %v1130_v53 = vor.u32 1.1754944e-38, %v1129_v51  ;;  %vm1128_vm1 = vcmp.eq.f32.partialorder %v1127_v10, 8.507059e+37 }
 0xd77   : > { %v1619_v46 = vpop.eup %1618 }
 0xd78   : > { %v1119_v47 = vmul.f32 %v1619_v46, %v1117_v45  ;;  %vm1124_vm13 = vweird.f32 %v1619_v46 }
 0xd79   : > { %vm1125_vm15 = vmor %vm1123_vm14, %vm1124_vm13 }
 0xd7a   : > { %v1120_v48 = vsub.f32 1.0, %v1119_v47 }
 0xd7c   : > { %v1121_v49 = vmul.f32 %v1619_v46, %v1120_v48 }
 0xd7e   : > { %v1122_v50 = vadd.f32 %v1619_v46, %v1121_v49 }
 0xd80   : > { %v1126_v52 = vsel %vm1125_vm15, %v1619_v46, %v1122_v50 }
 0xd81   : > { %v1131_v56 = vsel %vm1128_vm1, %v1130_v53, %v1126_v52 }
 0xd82   : > { %v1137_v59 = vmul.f32 %v1135_v58, %v1131_v56 }
 0xdc7   : > { %v1140_v55 = vpop.permute.xlu2 %1139 }
 0xdc8   : > { %v1142_v57 = vmul.f32 %v1140_v55, %v1131_v56 }
 0xdca   : > { %1144 = vrot.lane.b32.xlu0 %v1142_v57, %s2039_s21 }
 0xe3c   : > { %v1145_v60 = vpop.permute.xlu0 %1144 }
 0xe3d   : > { %v1147_v61 = vadd.f32 %v1145_v60, %v1137_v59  ;;  %v1526_v59 = vld [vmem:[%s2024_s11 + $0x8] sm:$0xff]  ;;  %v1525_v60 = vld [vmem:[%s2024_s11] sm:$0xff] }
 0xe3e   : > { %1318 = vmatpush.bf16.msra.mxu0 %v1526_v59 }
 0xe3f   : > { %1620 = vtanh.f32 %v1147_v61  ;;  %v1201_v25 = vrot.slane %v1147_v61, 7 }
 0xe42   : > { %1319 = vmatpush.bf16.msra.mxu0 %v1525_v60 }
 0xe45   : > { %v1621_v62 = vpop.eup %1620 }
 0xe46   : > { %1150 = vrot.lane.b32.xlu1 %v1621_v62, %s1704_s16 }
 0xeb8   : > { %v1151_v63 = vpop.permute.xlu1 %1150 }
 0xeb9   : > { %v1153_v0 = vmul.f32 %v1151_v63, %v1131_v56 }
 0xebb   : > { %v1154_v1 = vpack.c.bf16 %v1153_v0, %v1153_v0 }
 0xebd   : > { %v1156_v2 = vshrl.u32 %v1154_v1, 16 }
 0xebf   : > { %1158 = vrot.lane.b32.xlu2 %v1156_v2, %s2039_s21 }
 0xf19   : > { %v1159_v3 = vpop.permute.xlu2 %1158 }
 0xf1a   : > { %1493 = vmatmul.msk.bf16.vlgmr.msrb.gmra.mxu2 %vm532_vm4, %v1159_v3  ;;  %v1290_v3 = vld [vmem:[%s2025_s12] sm:$0x1] }
 0xf9d   : > { %v1172_v4 = vpop.f32.mrf.mxu2 }
 0xf9e   : > { %v1177_v5 = vrot.slane %v1172_v4, 6 }
 0xfa0   : > { %v1179_v6 = vadd.f32 %v1177_v5, %v1946_v12 }
 0xfa2   : > { %1622 = vtanh.f32 %v1179_v6  ;;  %v1494_v9 = vmul.f32 -1.442695, %v1179_v6 }
 0xfa4   : > { %1624 = vpow2.f32 %v1494_v9 }
 0xfa5   : > { %v1174_v7 = vpop.f32.mrf.mxu2 }
 0xfa8   : > { %v1623_v8 = vpop.eup %1622 }
 0xfa9   : > { %1205 = vrot.lane.b32.xlu0 %v1623_v8, %s1704_s16 }
 0xfaa   : > { %v1625_v11 = vpop.eup %1624 }
 0xfab   : > { %v1183_v54 = vadd.f32 1.0, %v1625_v11 }
 0xfad   : > { %1626 = vrcp.f32 %v1183_v54  ;;  %v1195_v18 = vand.u32 2147483648, %v1183_v54  ;;  %vm1189_vm3 = vweird.f32 %v1183_v54  ;;  %v1193_v19 = vand.u32 2147483647, %v1183_v54 }
 0xfaf   : > { %v1196_v21 = vor.u32 1.1754944e-38, %v1195_v18  ;;  %vm1194_vm5 = vcmp.eq.f32.partialorder %v1193_v19, 8.507059e+37 }
 0xfb3   : > { %v1627_v13 = vpop.eup %1626 }
 0xfb4   : > { %v1185_v14 = vmul.f32 %v1627_v13, %v1183_v54  ;;  %vm1190_vm2 = vweird.f32 %v1627_v13 }
 0xfb5   : > { %vm1191_vm0 = vmor %vm1189_vm3, %vm1190_vm2 }
 0xfb6   : > { %v1186_v15 = vsub.f32 1.0, %v1185_v14 }
 0xfb8   : > { %v1187_v16 = vmul.f32 %v1627_v13, %v1186_v15 }
 0xfba   : > { %v1188_v17 = vadd.f32 %v1627_v13, %v1187_v16 }
 0xfbc   : > { %v1192_v20 = vsel %vm1191_vm0, %v1627_v13, %v1188_v17 }
 0xfbd   : > { %v1197_v23 = vsel %vm1194_vm5, %v1196_v21, %v1192_v20 }
 0xfbe   : > { %v1203_v26 = vmul.f32 %v1201_v25, %v1197_v23 }
0x101b   : > { %v1206_v22 = vpop.permute.xlu0 %1205 }
0x101c   : > { %v1208_v24 = vmul.f32 %v1206_v22, %v1197_v23 }
0x101e   : > { %1210 = vrot.lane.b32.xlu1 %v1208_v24, %s2039_s21 }
0x1090   : > { %v1211_v27 = vpop.permute.xlu1 %1210 }
0x1091   : > { %v1213_v28 = vadd.f32 %v1211_v27, %v1203_v26 }
0x1093   : > { %1628 = vtanh.f32 %v1213_v28  ;;  %v1266_v53 = vrot.slane %v1213_v28, 7 }
0x1099   : > { %v1629_v29 = vpop.eup %1628 }
0x109a   : > { %1216 = vrot.lane.b32.xlu2 %v1629_v29, %s1704_s16 }
0x10f4   : > { %v1217_v30 = vpop.permute.xlu2 %1216 }
0x10f5   : > { %v1219_v31 = vmul.f32 %v1217_v30, %v1197_v23 }
0x10f7   : > { %v1220_v32 = vpack.c.bf16 %v1219_v31, %v1219_v31 }
0x10f9   : > { %v1222_v33 = vrot.slane %v1220_v32, 1 }
0x10fb   : > { %1223 = vrot.lane.b32.xlu0 %v1222_v33, %s2039_s21 }
0x116d   : > { %v1224_v35 = vpop.permute.xlu0 %1223 }
0x116e   : > { %1495 = vmatmul.msk.bf16.vlgmr.msrb.gmra.mxu3 %vm532_vm4, %v1224_v35 }
0x11f1   : > { %v1237_v36 = vpop.f32.mrf.mxu3 }
0x11f2   : > { %v1242_v37 = vrot.slane %v1237_v36, 5 }
0x11f4   : > { %v1244_v38 = vadd.f32 %v1242_v37, %v1946_v12 }
0x11f6   : > { %1630 = vtanh.f32 %v1244_v38  ;;  %v1496_v41 = vmul.f32 -1.442695, %v1244_v38 }
0x11f8   : > { %1632 = vpow2.f32 %v1496_v41 }
0x11f9   : > { %v1239_v39 = vpop.f32.mrf.mxu3 }
0x11fc   : > { %v1631_v40 = vpop.eup %1630 }
0x11fd   : > { %1270 = vrot.lane.b32.xlu1 %v1631_v40, %s1704_s16 }
0x11fe   : > { %v1633_v42 = vpop.eup %1632 }
0x11ff   : > { %v1248_v43 = vadd.f32 1.0, %v1633_v42 }
0x1201   : > { %1634 = vrcp.f32 %v1248_v43  ;;  %v1260_v48 = vand.u32 2147483648, %v1248_v43  ;;  %vm1254_vm7 = vweird.f32 %v1248_v43  ;;  %v1258_v49 = vand.u32 2147483647, %v1248_v43 }
0x1203   : > { %v1261_v50 = vor.u32 1.1754944e-38, %v1260_v48  ;;  %vm1259_vm9 = vcmp.eq.f32.partialorder %v1258_v49, 8.507059e+37 }
0x1207   : > { %v1635_v34 = vpop.eup %1634 }
0x1208   : > { %v1250_v44 = vmul.f32 %v1635_v34, %v1248_v43  ;;  %vm1255_vm6 = vweird.f32 %v1635_v34 }
0x1209   : > { %vm1256_vm8 = vmor %vm1254_vm7, %vm1255_vm6 }
0x120a   : > { %v1251_v45 = vsub.f32 1.0, %v1250_v44 }
0x120c   : > { %v1252_v46 = vmul.f32 %v1635_v34, %v1251_v45 }
0x120e   : > { %v1253_v47 = vadd.f32 %v1635_v34, %v1252_v46 }
0x1210   : > { %v1257_v12 = vsel %vm1256_vm8, %v1635_v34, %v1253_v47 }
0x1211   : > { %v1262_v10 = vsel %vm1259_vm9, %v1261_v50, %v1257_v12 }
0x1212   : > { %v1268_v55 = vmul.f32 %v1266_v53, %v1262_v10 }
0x126f   : > { %v1271_v51 = vpop.permute.xlu1 %1270 }
0x1270   : > { %v1273_v52 = vmul.f32 %v1271_v51, %v1262_v10 }
0x1272   : > { %1275 = vrot.lane.b32.xlu2 %v1273_v52, %s2039_s21 }
0x12cc   : > { %v1276_v56 = vpop.permute.xlu2 %1275 }
0x12cd   : > { %v1278_v57 = vadd.f32 %v1276_v56, %v1268_v55 }
0x12cf   : > { %1636 = vtanh.f32 %v1278_v57 }
0x12d5   : > { %v1637_v58 = vpop.eup %1636 }
0x12d6   : > { %1281 = vrot.lane.b32.xlu0 %v1637_v58, %s1704_s16  ;;  %s431_s16 = sand.u32 1, %s1692_s26  }
0x12d7   : > { %s432_s24 = scalar_lea.vmem [#allocation6], %s431_s16 }
0x12d8   : > { %s1338_s30 = sshll.u32 %s432_s24, 4  ;;  %s1339_s30 = int_to_ptr.vmem [resolvable:$true] %s1338_s30 }
0x1348   : > { %v1282_v61 = vpop.permute.xlu0 %1281 }
0x1349   : > { %v1284_v62 = vmul.f32 %v1282_v61, %v1262_v10 }
0x134b   : > { %v1285_v63 = vpack.c.bf16 %v1284_v62, %v1284_v62 }
0x134d   : > { %v1292_v0 = vshrl.u32 %v1285_v63, 16 }
0x134f   : > { %v1294_v1 = vrot.slane %v1292_v0, 1 }
0x1351   : > { %1295 = vrot.lane.b32.xlu1 %v1294_v1, %s2039_s21  ;;  %s1328_s21 = scalar_lea.sflag [#allocation7], %s431_s16 }
0x13c3   : > { %v1296_v2 = vpop.permute.xlu1 %1295 }
0x13c4   : > { %1505 = vmatmul.msk.bf16.vlgmr.msra.gmra.mxu0 %vm532_vm4, %v1296_v2 }
0x1441   : > { %v1321_v4 = vpop.f32.mrf.mxu0 }
0x1442   : > { %v1322_v5 = vadd.f32 %v1321_v4, %v1290_v3 }
0x1444   : > { %1326 = vst.msk [vmem:[%s432_s24] sm:$0x1] %vm1325_vm10, %v1322_v5 }
0x1445   : > { %1665 = shalt.err (!%p1662_p3)
}
0x1446   : > { %1527 = dma.vmem_to_hbm [thread:$0]  (%p1814_p5), %s1339_s30, 16, %s1341_s1, %s1328_s21  }
0x1449   : > { %v1323_v6 = vpop.f32.mrf.mxu0 }
0x144a PF: > { %p1533_p4 = scmp.ge.s32.totalorder %s1700_s28, 2  ;;  %s1352_s16 = sand.u32 1, %s1688_s25  }
0x144b   : > { %s1353_s0 = scalar_lea.sflag [#allocation7], %s1352_s16 }
0x144c   : > { %p1530_p7 = pnand %p1533_p4, %p1818_p6 }
0x144e   : > { %p1531_p8 = pneg %p1530_p7 }
0x1450   : > { %1683 = dma.done.wait (%p1531_p8), %s1353_s0, 16  }
0x1451   : > { %1685 = vsyncadd (%p1531_p8), %s1353_s0, 4294967280  ;;  %p23_p9 = scmp.ge.s32.totalorder %s1801_s14, 4   ;;  %s2040_s25 = smov %s1692_s26 }
0x1452   : > { %s2041_s26 = smov %s1696_s27  ;;  %s2042_s27 = smov %s1812_s17 }
0x1453   : > { %s2043_s28 = smov %s1801_s14  ;;  %25 = sbr.rel (!%p23_p9) target bundleno = 8 (0x8), region = 113 }
0x1458   :  { %1358 = vsyncpa [#allocation7], 1 }
0x1459   :  { %1360 = vsyncpa [#allocation7 + $0x1], 1 }

</bundles_post_ra>
